<compile_context>
chip_gen: v5e
topology: v5e:2x2
jax: 0.10.0
libtpu: 0.0.40
codegen_flags: <defaults>
</compile_context>

<pallas_src>
import functools

import jax
import jax.numpy as jnp
from jax.experimental import pallas as pl
from jax.experimental.pallas import tpu as pltpu

EPS = 1e-5


# ------------------------------------------------------------------ tuning --

@functools.lru_cache(maxsize=None)
def _vmem_limit_bytes():
    """Generation-aware scoped VMEM limit (v7x: 64 MiB physical; v5e/v6e: 128)."""
    try:
        cap = int(pltpu.get_tpu_info().vmem_capacity_bytes)
    except Exception:  # non-TPU / interpret-mode fallback
        cap = 128 * 1024 * 1024
    return int(max(32 << 20, min(cap - (16 << 20), 100 << 20)))


def _compiler_params(n_axes):
    return pltpu.CompilerParams(
        dimension_semantics=("parallel",) * n_axes,
        vmem_limit_bytes=_vmem_limit_bytes(),
    )


def _row_tile(n, cin, cout, budget_bytes=4 << 20, max_rows=2048):
    """Largest row tile that divides n, fits a per-tile byte budget and is
    sublane aligned (16 rows for bf16-friendly tiles, 8 otherwise)."""
    if n % 8 != 0:
        # TODO(synk): pad N to a multiple of 8 in the wrapper (with masked
        # stats) instead of degenerating to a single full-extent tile.
        return n
    align = 16 if n % 16 == 0 else 8
    per_row = 4 * cin + 2 * cout + 4 * cout          # input + bf16 out + f32 acc
    target = max(align, min(max_rows, budget_bytes // max(per_row, 1)))
    d = min(target, n)
    d -= d % align
    while d >= align:
        if n % d == 0:
            return d
        d -= align
    return align


def _spatial_tile(H, W, C, Cout, use_im2col, budget_bytes=3 << 20):
    """Output rows per 3x3-conv grid step (bounds per-tile VMEM)."""
    per_row = (W + 2) * C * 2 + W * Cout * (2 + 4)
    if use_im2col:
        per_row += W * 9 * C * 4                      # f32 im2col patches
    target = max(1, budget_bytes // max(per_row, 1))
    th = 1
    for d in range(1, H + 1):
        if H % d == 0 and d <= target:
            th = d
    return th


# ------------------------------------------------------------------ kernels --

def _make_conv1x1_stats_kernel(pre_affine_relu):
    """Row-tiled 1x1 conv as a bf16 MXU matmul with f32 accumulation.

    Optionally applies the previous BatchNorm folded into a per-channel
    scale/shift + ReLU first.  Emits per-tile partial [sum, sum_sq] of the f32
    conv output (computed BEFORE the bf16 store) so the next BatchNorm's batch
    statistics are reduced outside the kernel in a single pass.
    """
    if pre_affine_relu:
        def kernel(x_ref, scale_ref, shift_ref, w_ref, y_ref, stats_ref):
            h = jnp.maximum(
                x_ref[...].astype(jnp.float32) * scale_ref[...] + shift_ref[...],
                0.0)
            y = jnp.dot(h.astype(jnp.bfloat16), w_ref[...],
                        preferred_element_type=jnp.float32)
            y_ref[...] = y.astype(y_ref.dtype)
            s = jnp.sum(y, axis=0, keepdims=True)
            ss = jnp.sum(y * y, axis=0, keepdims=True)
            stats_ref[...] = jnp.concatenate([s, ss], axis=0)[None]
    else:
        def kernel(x_ref, w_ref, y_ref, stats_ref):
            y = jnp.dot(x_ref[...].astype(jnp.bfloat16), w_ref[...],
                        preferred_element_type=jnp.float32)
            y_ref[...] = y.astype(y_ref.dtype)
            s = jnp.sum(y, axis=0, keepdims=True)
            ss = jnp.sum(y * y, axis=0, keepdims=True)
            stats_ref[...] = jnp.concatenate([s, ss], axis=0)[None]
    return kernel


def _make_bn_relu_conv3x3_kernel(th, W, C, Cout, use_im2col):
    """Per (batch, row-block) window: folded-BN affine + ReLU, 3x3 conv on the
    pre-reflect-padded (th+2, W+2, C) window, plus partial output stats.

    use_im2col (C < 128): one fused K=9*C matmul.  Otherwise 9 accumulated
    K=C matmuls — the MXU is already fed and this avoids the 9x patches buffer
    and the lane-axis concatenate.
    """
    def kernel(x_ref, scale_ref, shift_ref, w_ref, y_ref, stats_ref):
        xw = x_ref[0]                                           # (th+2, W+2, C)
        h = jnp.maximum(
            xw.astype(jnp.float32) * scale_ref[...] + shift_ref[...], 0.0)
        if use_im2col:
            cols = [h[dh:dh + th, dw:dw + W, :]
                    for dh in range(3) for dw in range(3)]
            patches = jnp.concatenate(cols, axis=-1).reshape(th * W, 9 * C)
            y = jnp.dot(patches.astype(jnp.bfloat16), w_ref[...],
                        preferred_element_type=jnp.float32)
        else:
            hb = h.astype(jnp.bfloat16)
            y = jnp.zeros((th * W, Cout), jnp.float32)
            for k in range(9):
                dh, dw = divmod(k, 3)
                tap = hb[dh:dh + th, dw:dw + W, :].reshape(th * W, C)
                y = y + jnp.dot(tap, w_ref[k * C:(k + 1) * C, :],
                                preferred_element_type=jnp.float32)
        y_ref[...] = y.reshape(1, th, W, Cout).astype(y_ref.dtype)
        s = jnp.sum(y, axis=0, keepdims=True)
        ss = jnp.sum(y * y, axis=0, keepdims=True)
        stats_ref[...] = jnp.concatenate([s, ss], axis=0)[None]
    return kernel


def _bn_add_relu_kernel(y_ref, idn_ref, scale_ref, shift_ref, out_ref):
    out_ref[...] = jnp.maximum(
        y_ref[...].astype(jnp.float32) * scale_ref[...] + shift_ref[...]
        + idn_ref[...].astype(jnp.float32), 0.0)


# ------------------------------------------------------------------ helpers --

def _finish_stats(stats, gamma, beta, count):
    """Per-tile partial [sum, sum_sq] -> folded BN (scale, shift).

    Biased variance (PyTorch BatchNorm normalization), clamped at 0 to guard
    the E[x^2]-E[x]^2 cancellation.
    TODO(synk): for very large N switch to per-tile (count, mean, M2) partials
    combined with Chan's parallel-variance formula.
    """
    stats = stats.reshape(-1, 2, stats.shape[-1])
    s = jnp.sum(stats[:, 0, :], axis=0)
    ss = jnp.sum(stats[:, 1, :], axis=0)
    mean = s / count
    var = jnp.maximum(ss / count - mean * mean, 0.0)
    scale = gamma * jax.lax.rsqrt(var + EPS)
    shift = beta - mean * scale
    return scale[None, :], shift[None, :]                # (1, C) each


# ------------------------------------------------------------- stage drivers --

def _conv1x1_stats(x2d, w_bf16, *, scale=None, shift=None):
    N, Cin = x2d.shape
    Cout = w_bf16.shape[1]
    tn = _row_tile(N, Cin, Cout)
    tiles = N // tn
    pre = scale is not None
    kernel = _make_conv1x1_stats_kernel(pre)

    in_arrays = [x2d] + ([scale, shift] if pre else []) + [w_bf16]
    in_specs = [pl.BlockSpec((tn, Cin), lambda i: (i, 0))]
    if pre:
        in_specs += [pl.BlockSpec((1, Cin), lambda i: (0, 0)),
                     pl.BlockSpec((1, Cin), lambda i: (0, 0))]
    # NOTE: weight / scale / shift blocks are grid-invariant; pl.Buffered(1)
    # pipeline_mode on them would reclaim the second VMEM buffer.
    in_specs += [pl.BlockSpec((Cin, Cout), lambda i: (0, 0))]

    flops = 2 * N * Cin * Cout
    bytes_accessed = (x2d.dtype.itemsize * N * Cin + 2 * Cin * Cout
                      + 2 * N * Cout + 4 * tiles * 2 * Cout)

    y, stats = pl.pallas_call(
        kernel,
        grid=(tiles,),
        in_specs=in_specs,
        out_specs=(
            pl.BlockSpec((tn, Cout), lambda i: (i, 0)),
            pl.BlockSpec((1, 2, Cout), lambda i: (i, 0, 0)),
        ),
        out_shape=(
            jax.ShapeDtypeStruct((N, Cout), jnp.bfloat16),
            jax.ShapeDtypeStruct((tiles, 2, Cout), jnp.float32),
        ),
        compiler_params=_compiler_params(1),
        cost_estimate=pl.CostEstimate(flops=int(flops), transcendentals=0,
                                      bytes_accessed=int(bytes_accessed)),
    )(*in_arrays)
    return y, stats


def _bn_relu_conv3x3_stats(y1, scale, shift, w2col_bf16, B, H, W):
    C = y1.shape[-1]
    Cout = w2col_bf16.shape[1]
    use_im2col = C < 128
    th = _spatial_tile(H, W, C, Cout, use_im2col)
    nT = H // th
    G = B * nT

    x4 = y1.reshape(B, H, W, C)
    # Reflect-pad once in the wrapper, then gather overlapping (th+2)-row
    # windows so every grid step is a bounded non-overlapping block: per-tile
    # VMEM is O(th*W*C) and the grid has B*nT steps for pipelining / megacore.
    # TODO(synk): a halo BlockSpec (pl.Element on the padded H dim) would avoid
    # the ~(th+2)/th duplicated rows of this gather.
    hp = jnp.pad(x4, ((0, 0), (1, 1), (1, 1), (0, 0)), mode="reflect")
    win = jnp.stack([hp[:, t * th:t * th + th + 2] for t in range(nT)], axis=1)
    win = win.reshape(G, th + 2, W + 2, C)

    kernel = _make_bn_relu_conv3x3_kernel(th, W, C, Cout, use_im2col)
    flops = 2 * B * H * W * 9 * C * Cout
    bytes_accessed = (2 * G * (th + 2) * (W + 2) * C + 2 * 9 * C * Cout
                      + 2 * B * H * W * Cout + 4 * G * 2 * Cout)

    y2, stats = pl.pallas_call(
        kernel,
        grid=(G,),
        in_specs=[
            pl.BlockSpec((1, th + 2, W + 2, C), lambda g: (g, 0, 0, 0)),
            pl.BlockSpec((1, C), lambda g: (0, 0)),
            pl.BlockSpec((1, C), lambda g: (0, 0)),
            pl.BlockSpec((9 * C, Cout), lambda g: (0, 0)),
        ],
        out_specs=(
            pl.BlockSpec((1, th, W, Cout), lambda g: (g, 0, 0, 0)),
            pl.BlockSpec((1, 2, Cout), lambda g: (g, 0, 0)),
        ),
        out_shape=(
            jax.ShapeDtypeStruct((G, th, W, Cout), jnp.bfloat16),
            jax.ShapeDtypeStruct((G, 2, Cout), jnp.float32),
        ),
        compiler_params=_compiler_params(1),
        cost_estimate=pl.CostEstimate(flops=int(flops), transcendentals=0,
                                      bytes_accessed=int(bytes_accessed)),
    )(win, scale, shift, w2col_bf16)
    return y2.reshape(B * H * W, Cout), stats


def _bn_add_relu(y3, identity2d, scale, shift):
    N, C = y3.shape
    tn = _row_tile(N, 2 * C, C)
    tiles = N // tn
    return pl.pallas_call(
        _bn_add_relu_kernel,
        grid=(tiles,),
        in_specs=[
            pl.BlockSpec((tn, C), lambda i: (i, 0)),
            pl.BlockSpec((tn, C), lambda i: (i, 0)),
            pl.BlockSpec((1, C), lambda i: (0, 0)),
            pl.BlockSpec((1, C), lambda i: (0, 0)),
        ],
        out_specs=pl.BlockSpec((tn, C), lambda i: (i, 0)),
        out_shape=jax.ShapeDtypeStruct((N, C), jnp.float32),
        compiler_params=_compiler_params(1),
        cost_estimate=pl.CostEstimate(
            flops=int(4 * N * C), transcendentals=0,
            bytes_accessed=int(2 * N * C + 4 * N * C + 4 * N * C + 8 * C)),
    )(y3, identity2d, scale, shift)


# --------------------------------------------------------------- full block --

def bottleneck_forward(x, p, *, channels_last=False):
    """Bottleneck forward (stride=1, groups=1, dilation=1, downsample=None).

    x: (B, inplanes, H, W) f32 (NCHW like the PyTorch module), or
       (B, H, W, inplanes) with channels_last=True (drops the wrapper
       transposes when the surrounding model is NHWC).
    """
    if channels_last:
        B, H, W, Cin = x.shape
        xh = x
    else:
        B, Cin, H, W = x.shape
        xh = jnp.transpose(x, (0, 2, 3, 1))              # channels on lanes
    assert H >= 2 and W >= 2, "reflect padding needs H, W >= 2"
    cout = p["w3"].shape[1]
    assert Cin == cout, "identity shortcut requires inplanes == planes*4"
    N = B * H * W
    x2d = xh.reshape(N, Cin)

    # bf16 weight copies for the MXU (accumulation stays f32 in-kernel).
    w1 = p["w1"].astype(jnp.bfloat16)
    w2 = p["w2col"].astype(jnp.bfloat16)
    w3 = p["w3"].astype(jnp.bfloat16)

    # conv1 (1x1) + partial stats for bn1
    y1, st1 = _conv1x1_stats(x2d, w1)
    sc1, sh1 = _finish_stats(st1, p["g1"], p["b1"], N)

    # bn1 + relu + conv2 (3x3 reflect, row-tiled) + partial stats for bn2
    y2, st2 = _bn_relu_conv3x3_stats(y1, sc1, sh1, w2, B, H, W)
    sc2, sh2 = _finish_stats(st2, p["g2"], p["b2"], N)

    # bn2 + relu + conv3 (1x1) + partial stats for bn3
    y3, st3 = _conv1x1_stats(y2, w3, scale=sc2, shift=sh2)
    sc3, sh3 = _finish_stats(st3, p["g3"], p["b3"], N)

    # bn3 + identity add + relu (f32 output)
    out2d = _bn_add_relu(y3, x2d, sc3, sh3)
    out = out2d.reshape(B, H, W, cout)
    return out if channels_last else jnp.transpose(out, (0, 3, 1, 2))


# ------------------------------------------------------------------- params --

def make_params(key, inplanes, planes, base_width=64, groups=1):
    """Synthetic parameters in kernel-friendly layouts (kept in f32; the
    wrapper casts bf16 copies for the MXU).

    w1 : (inplanes, width)        == conv1.weight[:, :, 0, 0].T
    w2 : (3, 3, width, width)     == conv2.weight.transpose(2, 3, 1, 0)
    w3 : (width, 4*planes)        == conv3.weight[:, :, 0, 0].T
    g*, b*: BatchNorm2d affine weight/bias.
    """
    width = int(planes * (base_width / 64.0)) * groups
    cout = planes * 4
    ks = jax.random.split(key, 10)
    s = 0.1
    w2 = s * jax.random.normal(ks[1], (3, 3, width, width), jnp.float32)
    return {
        "w1": s * jax.random.normal(ks[0], (inplanes, width), jnp.float32),
        "w2": w2,                                # reference layout
        "w2col": w2.reshape(9 * width, width),   # im2col / per-tap layout
        "w3": s * jax.random.normal(ks[2], (width, cout), jnp.float32),
        "g1": 1.0 + 0.1 * jax.random.normal(ks[3], (width,), jnp.float32),
        "b1": 0.1 * jax.random.normal(ks[4], (width,), jnp.float32),
        "g2": 1.0 + 0.1 * jax.random.normal(ks[5], (width,), jnp.float32),
        "b2": 0.1 * jax.random.normal(ks[6], (width,), jnp.float32),
        "g3": 1.0 + 0.1 * jax.random.normal(ks[7], (cout,), jnp.float32),
        "b3": 0.1 * jax.random.normal(ks[8], (cout,), jnp.float32),
    }


# ---------------------------------------------------------------- reference --

def reference_forward(x_nchw, p):
    """Pure-JAX f32 replica of the PyTorch forward (batch-stat BN, reflect pad)."""
    x = jnp.transpose(x_nchw, (0, 2, 3, 1))
    B, H, W, _ = x.shape

    def bn(v, gamma, beta):
        mean = v.mean(axis=(0, 1, 2))
        var = ((v - mean) ** 2).mean(axis=(0, 1, 2))
        return gamma * (v - mean) * jax.lax.rsqrt(var + EPS) + beta

    y1 = jnp.einsum("bhwc,cd->bhwd", x, p["w1"])
    h1 = jnp.maximum(bn(y1, p["g1"], p["b1"]), 0.0)
    hp = jnp.pad(h1, ((0, 0), (1, 1), (1, 1), (0, 0)), mode="reflect")
    y2 = sum(
        jnp.einsum("bhwc,cd->bhwd",
                   hp[:, dh:dh + H, dw:dw + W, :], p["w2"][dh, dw])
        for dh in range(3) for dw in range(3))
    h2 = jnp.maximum(bn(y2, p["g2"], p["b2"]), 0.0)
    y3 = jnp.einsum("bhwc,cd->bhwd", h2, p["w3"])
    out = jnp.maximum(bn(y3, p["g3"], p["b3"]) + x, 0.0)
    return jnp.transpose(out, (0, 3, 1, 2))


if __name__ == "__main__":
    # small shapes: batch=2, inplanes=32, planes=8 (-> width=8, out=32), 8x8 spatial
    B, inplanes, planes, H, W = 2, 32, 8, 8, 8
    assert inplanes == planes * 4, "identity shortcut requires inplanes == planes*4"

    key = jax.random.PRNGKey(0)
    kx, kp = jax.random.split(key)
    x = jax.random.normal(kx, (B, inplanes, H, W), jnp.float32)
    params = make_params(kp, inplanes, planes)

    fwd = jax.jit(bottleneck_forward)
    out = jax.block_until_ready(fwd(x, params))
    ref = reference_forward(x, params)

    assert out.shape == (B, planes * 4, H, W)
    err = float(jnp.max(jnp.abs(out - ref)))
    # bf16 MXU operands + bf16 intermediate activations -> tolerance is looser
    # than the pure-f32 reference (batch-stat BN amplifies small differences).
    assert jnp.allclose(out, ref, atol=1e-1, rtol=1e-1), f"mismatch vs reference: {err}"

    print("KERNEL_OK")
</pallas_src>

<mosaic_0001>
module attributes {stable_mosaic.version = 11 : i64} {
  func.func @kernel(%arg0: i32, %arg1: memref<128x32xf32, #tpu.memory_space<vmem>>, %arg2: memref<32x8xbf16, #tpu.memory_space<vmem>>, %arg3: memref<128x8xbf16, #tpu.memory_space<vmem>>, %arg4: memref<1x2x8xf32, #tpu.memory_space<vmem>>) attributes {dimension_semantics = [#tpu.dimension_semantics<parallel>], iteration_bounds = array<i64: 1>, scalar_prefetch = 0 : i64, scratch_operands = 0 : i64, tpu.core_type = #tpu.core_type<tc>, window_params = [{transform_indices = @transform_0, window_bounds = array<i64: 128, 32>}, {pipeline_mode = #tpu.pipeline_mode<synchronous>, transform_indices = @transform_1, window_bounds = array<i64: 32, 8>}, {transform_indices = @transform_2, window_bounds = array<i64: 128, 8>}, {transform_indices = @transform_3, window_bounds = array<i64: 1, 2, 8>}]} {
    %c0 = arith.constant 0 : index
    %c0_0 = arith.constant 0 : index
    %0 = vector.load %arg1[%c0, %c0_0] : memref<128x32xf32, #tpu.memory_space<vmem>>, vector<128x32xf32>
    %1 = arith.truncf %0 : vector<128x32xf32> to vector<128x32xbf16>
    %c0_1 = arith.constant 0 : index
    %c0_2 = arith.constant 0 : index
    %2 = vector.load %arg2[%c0_1, %c0_2] : memref<32x8xbf16, #tpu.memory_space<vmem>>, vector<32x8xbf16>
    %cst = arith.constant dense<0.000000e+00> : vector<128x8xf32>
    %3 = tpu.matmul %1, %2, %cst {dimension_numbers = #tpu.dot_dimension_numbers<[1], [0], [0], [1], [0, 0, 1, 1], [], []>} : vector<128x32xbf16>, vector<32x8xbf16>, vector<128x8xf32> -> vector<128x8xf32>
    %4 = arith.truncf %3 : vector<128x8xf32> to vector<128x8xbf16>
    %c0_3 = arith.constant 0 : index
    %c0_4 = arith.constant 0 : index
    %5 = vector.load %arg3[%c0_3, %c0_4] : memref<128x8xbf16, #tpu.memory_space<vmem>>, vector<128x8xbf16>
    tpu.vector_store %arg3[%c0_3, %c0_4], %4 {strides = array<i32>} : memref<128x8xbf16, #tpu.memory_space<vmem>>, vector<128x8xbf16>,
    %cst_5 = arith.constant dense<0.000000e+00> : vector<8xf32>
    %6 = vector.multi_reduction <add>, %3, %cst_5 [0] : vector<128x8xf32> to vector<8xf32>
    %7 = vector.shape_cast %6 : vector<8xf32> to vector<1x8xf32>
    %8 = arith.mulf %3, %3 : vector<128x8xf32>
    %cst_6 = arith.constant dense<0.000000e+00> : vector<8xf32>
    %9 = vector.multi_reduction <add>, %8, %cst_6 [0] : vector<128x8xf32> to vector<8xf32>
    %10 = vector.shape_cast %9 : vector<8xf32> to vector<1x8xf32>
    %11 = tpu.concatenate %7, %10 in 0 : vector<1x8xf32>, vector<1x8xf32> -> vector<2x8xf32>
    %12 = vector.shape_cast %11 : vector<2x8xf32> to vector<1x2x8xf32>
    %c0_7 = arith.constant 0 : index
    %c0_8 = arith.constant 0 : index
    %c0_9 = arith.constant 0 : index
    %13 = vector.load %arg4[%c0_7, %c0_8, %c0_9] : memref<1x2x8xf32, #tpu.memory_space<vmem>>, vector<1x2x8xf32>
    tpu.vector_store %arg4[%c0_7, %c0_8, %c0_9], %12 {strides = array<i32>} : memref<1x2x8xf32, #tpu.memory_space<vmem>>, vector<1x2x8xf32>,
    return
  }
  func.func @transform_0(%arg0: i32) -> (i32, i32) {
    %c0_i32 = arith.constant 0 : i32
    %c0_i32_0 = arith.constant 0 : i32
    return %arg0, %c0_i32 : i32, i32
  }
  func.func @transform_1(%arg0: i32) -> (i32, i32) {
    %c0_i32 = arith.constant 0 : i32
    %c0_i32_0 = arith.constant 0 : i32
    %c0_i32_1 = arith.constant 0 : i32
    return %c0_i32, %c0_i32_0 : i32, i32
  }
  func.func @transform_2(%arg0: i32) -> (i32, i32) {
    %c0_i32 = arith.constant 0 : i32
    %c0_i32_0 = arith.constant 0 : i32
    return %arg0, %c0_i32 : i32, i32
  }
  func.func @transform_3(%arg0: i32) -> (i32, i32, i32) {
    %c0_i32 = arith.constant 0 : i32
    %c0_i32_0 = arith.constant 0 : i32
    %c0_i32_1 = arith.constant 0 : i32
    return %arg0, %c0_i32, %c0_i32_0 : i32, i32, i32
  }
}

module attributes {stable_mosaic.version = 11 : i64} {
  func.func @kernel(%arg0: i32, %arg1: memref<128x8xbf16, #tpu.memory_space<vmem>>, %arg2: memref<1x8xf32, #tpu.memory_space<vmem>>, %arg3: memref<1x8xf32, #tpu.memory_space<vmem>>, %arg4: memref<8x32xbf16, #tpu.memory_space<vmem>>, %arg5: memref<128x32xbf16, #tpu.memory_space<vmem>>, %arg6: memref<1x2x32xf32, #tpu.memory_space<vmem>>) attributes {dimension_semantics = [#tpu.dimension_semantics<parallel>], iteration_bounds = array<i64: 1>, scalar_prefetch = 0 : i64, scratch_operands = 0 : i64, tpu.core_type = #tpu.core_type<tc>, window_params = [{transform_indices = @transform_0, window_bounds = array<i64: 128, 8>}, {pipeline_mode = #tpu.pipeline_mode<synchronous>, transform_indices = @transform_1, window_bounds = array<i64: 1, 8>}, {pipeline_mode = #tpu.pipeline_mode<synchronous>, transform_indices = @transform_2, window_bounds = array<i64: 1, 8>}, {pipeline_mode = #tpu.pipeline_mode<synchronous>, transform_indices = @transform_3, window_bounds = array<i64: 8, 32>}, {transform_indices = @transform_4, window_bounds = array<i64: 128, 32>}, {transform_indices = @transform_5, window_bounds = array<i64: 1, 2, 32>}]} {
    %c0 = arith.constant 0 : index
    %c0_0 = arith.constant 0 : index
    %0 = vector.load %arg1[%c0, %c0_0] : memref<128x8xbf16, #tpu.memory_space<vmem>>, vector<128x8xbf16>
    %1 = arith.extf %0 : vector<128x8xbf16> to vector<128x8xf32>
    %c0_1 = arith.constant 0 : index
    %c0_2 = arith.constant 0 : index
    %2 = vector.load %arg2[%c0_1, %c0_2] : memref<1x8xf32, #tpu.memory_space<vmem>>, vector<1x8xf32>
    %3 = vector.broadcast %2 : vector<1x8xf32> to vector<128x8xf32>
    %4 = arith.mulf %1, %3 : vector<128x8xf32>
    %c0_3 = arith.constant 0 : index
    %c0_4 = arith.constant 0 : index
    %5 = vector.load %arg3[%c0_3, %c0_4] : memref<1x8xf32, #tpu.memory_space<vmem>>, vector<1x8xf32>
    %6 = vector.broadcast %5 : vector<1x8xf32> to vector<128x8xf32>
    %7 = arith.addf %4, %6 : vector<128x8xf32>
    %cst = arith.constant 0.000000e+00 : f32
    %8 = vector.broadcast %cst : f32 to vector<128x8xf32>
    %9 = arith.maximumf %7, %8 : vector<128x8xf32>
    %10 = arith.truncf %9 : vector<128x8xf32> to vector<128x8xbf16>
    %c0_5 = arith.constant 0 : index
    %c0_6 = arith.constant 0 : index
    %11 = vector.load %arg4[%c0_5, %c0_6] : memref<8x32xbf16, #tpu.memory_space<vmem>>, vector<8x32xbf16>
    %cst_7 = arith.constant dense<0.000000e+00> : vector<128x32xf32>
    %12 = tpu.matmul %10, %11, %cst_7 {dimension_numbers = #tpu.dot_dimension_numbers<[1], [0], [0], [1], [0, 0, 1, 1], [], []>} : vector<128x8xbf16>, vector<8x32xbf16>, vector<128x32xf32> -> vector<128x32xf32>
    %13 = arith.truncf %12 : vector<128x32xf32> to vector<128x32xbf16>
    %c0_8 = arith.constant 0 : index
    %c0_9 = arith.constant 0 : index
    %14 = vector.load %arg5[%c0_8, %c0_9] : memref<128x32xbf16, #tpu.memory_space<vmem>>, vector<128x32xbf16>
    tpu.vector_store %arg5[%c0_8, %c0_9], %13 {strides = array<i32>} : memref<128x32xbf16, #tpu.memory_space<vmem>>, vector<128x32xbf16>,
    %cst_10 = arith.constant dense<0.000000e+00> : vector<32xf32>
    %15 = vector.multi_reduction <add>, %12, %cst_10 [0] : vector<128x32xf32> to vector<32xf32>
    %16 = vector.shape_cast %15 : vector<32xf32> to vector<1x32xf32>
    %17 = arith.mulf %12, %12 : vector<128x32xf32>
    %cst_11 = arith.constant dense<0.000000e+00> : vector<32xf32>
    %18 = vector.multi_reduction <add>, %17, %cst_11 [0] : vector<128x32xf32> to vector<32xf32>
    %19 = vector.shape_cast %18 : vector<32xf32> to vector<1x32xf32>
    %20 = tpu.concatenate %16, %19 in 0 : vector<1x32xf32>, vector<1x32xf32> -> vector<2x32xf32>
    %21 = vector.shape_cast %20 : vector<2x32xf32> to vector<1x2x32xf32>
    %c0_12 = arith.constant 0 : index
    %c0_13 = arith.constant 0 : index
    %c0_14 = arith.constant 0 : index
    %22 = vector.load %arg6[%c0_12, %c0_13, %c0_14] : memref<1x2x32xf32, #tpu.memory_space<vmem>>, vector<1x2x32xf32>
    tpu.vector_store %arg6[%c0_12, %c0_13, %c0_14], %21 {strides = array<i32>} : memref<1x2x32xf32, #tpu.memory_space<vmem>>, vector<1x2x32xf32>,
    return
  }
  func.func @transform_0(%arg0: i32) -> (i32, i32) {
    %c0_i32 = arith.constant 0 : i32
    %c0_i32_0 = arith.constant 0 : i32
    return %arg0, %c0_i32 : i32, i32
  }
  func.func @transform_1(%arg0: i32) -> (i32, i32) {
    %c0_i32 = arith.constant 0 : i32
    %c0_i32_0 = arith.constant 0 : i32
    %c0_i32_1 = arith.constant 0 : i32
    return %c0_i32, %c0_i32_0 : i32, i32
  }
  func.func @transform_2(%arg0: i32) -> (i32, i32) {
    %c0_i32 = arith.constant 0 : i32
    %c0_i32_0 = arith.constant 0 : i32
    %c0_i32_1 = arith.constant 0 : i32
    return %c0_i32, %c0_i32_0 : i32, i32
  }
  func.func @transform_3(%arg0: i32) -> (i32, i32) {
    %c0_i32 = arith.constant 0 : i32
    %c0_i32_0 = arith.constant 0 : i32
    %c0_i32_1 = arith.constant 0 : i32
    return %c0_i32, %c0_i32_0 : i32, i32
  }
  func.func @transform_4(%arg0: i32) -> (i32, i32) {
    %c0_i32 = arith.constant 0 : i32
    %c0_i32_0 = arith.constant 0 : i32
    return %arg0, %c0_i32 : i32, i32
  }
  func.func @transform_5(%arg0: i32) -> (i32, i32, i32) {
    %c0_i32 = arith.constant 0 : i32
    %c0_i32_0 = arith.constant 0 : i32
    %c0_i32_1 = arith.constant 0 : i32
    return %arg0, %c0_i32, %c0_i32_0 : i32, i32, i32
  }
}

module attributes {stable_mosaic.version = 11 : i64} {
  func.func @kernel(%arg0: i32, %arg1: memref<1x10x10x8xbf16, #tpu.memory_space<vmem>>, %arg2: memref<1x8xf32, #tpu.memory_space<vmem>>, %arg3: memref<1x8xf32, #tpu.memory_space<vmem>>, %arg4: memref<72x8xbf16, #tpu.memory_space<vmem>>, %arg5: memref<1x8x8x8xbf16, #tpu.memory_space<vmem>>, %arg6: memref<1x2x8xf32, #tpu.memory_space<vmem>>) attributes {dimension_semantics = [#tpu.dimension_semantics<parallel>], iteration_bounds = array<i64: 2>, scalar_prefetch = 0 : i64, scratch_operands = 0 : i64, tpu.core_type = #tpu.core_type<tc>, window_params = [{transform_indices = @transform_0, window_bounds = array<i64: 1, 10, 10, 8>}, {pipeline_mode = #tpu.pipeline_mode<synchronous>, transform_indices = @transform_1, window_bounds = array<i64: 1, 8>}, {pipeline_mode = #tpu.pipeline_mode<synchronous>, transform_indices = @transform_2, window_bounds = array<i64: 1, 8>}, {pipeline_mode = #tpu.pipeline_mode<synchronous>, transform_indices = @transform_3, window_bounds = array<i64: 72, 8>}, {transform_indices = @transform_4, window_bounds = array<i64: 1, 8, 8, 8>}, {transform_indices = @transform_5, window_bounds = array<i64: 1, 2, 8>}]} {
    %c0 = arith.constant 0 : index
    %c0_0 = arith.constant 0 : index
    %c0_1 = arith.constant 0 : index
    %c0_2 = arith.constant 0 : index
    %0 = vector.load %arg1[%c0, %c0_0, %c0_1, %c0_2] : memref<1x10x10x8xbf16, #tpu.memory_space<vmem>>, vector<1x10x10x8xbf16>
    %1 = vector.shape_cast %0 : vector<1x10x10x8xbf16> to vector<10x10x8xbf16>
    %2 = arith.extf %1 : vector<10x10x8xbf16> to vector<10x10x8xf32>
    %c0_3 = arith.constant 0 : index
    %c0_4 = arith.constant 0 : index
    %3 = vector.load %arg2[%c0_3, %c0_4] : memref<1x8xf32, #tpu.memory_space<vmem>>, vector<1x8xf32>
    %4 = vector.shape_cast %3 : vector<1x8xf32> to vector<1x1x8xf32>
    %5 = vector.broadcast %4 : vector<1x1x8xf32> to vector<10x10x8xf32>
    %6 = arith.mulf %2, %5 : vector<10x10x8xf32>
    %c0_5 = arith.constant 0 : index
    %c0_6 = arith.constant 0 : index
    %7 = vector.load %arg3[%c0_5, %c0_6] : memref<1x8xf32, #tpu.memory_space<vmem>>, vector<1x8xf32>
    %8 = vector.shape_cast %7 : vector<1x8xf32> to vector<1x1x8xf32>
    %9 = vector.broadcast %8 : vector<1x1x8xf32> to vector<10x10x8xf32>
    %10 = arith.addf %6, %9 : vector<10x10x8xf32>
    %cst = arith.constant 0.000000e+00 : f32
    %11 = vector.broadcast %cst : f32 to vector<10x10x8xf32>
    %12 = arith.maximumf %10, %11 : vector<10x10x8xf32>
    %13 = vector.extract_strided_slice %12 {offsets = [0, 0, 0], sizes = [8, 8, 8], strides = [1, 1, 1]} : vector<10x10x8xf32> to vector<8x8x8xf32>
    %14 = vector.extract_strided_slice %12 {offsets = [0, 1, 0], sizes = [8, 8, 8], strides = [1, 1, 1]} : vector<10x10x8xf32> to vector<8x8x8xf32>
    %15 = vector.extract_strided_slice %12 {offsets = [0, 2, 0], sizes = [8, 8, 8], strides = [1, 1, 1]} : vector<10x10x8xf32> to vector<8x8x8xf32>
    %16 = vector.extract_strided_slice %12 {offsets = [1, 0, 0], sizes = [8, 8, 8], strides = [1, 1, 1]} : vector<10x10x8xf32> to vector<8x8x8xf32>
    %17 = vector.extract_strided_slice %12 {offsets = [1, 1, 0], sizes = [8, 8, 8], strides = [1, 1, 1]} : vector<10x10x8xf32> to vector<8x8x8xf32>
    %18 = vector.extract_strided_slice %12 {offsets = [1, 2, 0], sizes = [8, 8, 8], strides = [1, 1, 1]} : vector<10x10x8xf32> to vector<8x8x8xf32>
    %19 = vector.extract_strided_slice %12 {offsets = [2, 0, 0], sizes = [8, 8, 8], strides = [1, 1, 1]} : vector<10x10x8xf32> to vector<8x8x8xf32>
    %20 = vector.extract_strided_slice %12 {offsets = [2, 1, 0], sizes = [8, 8, 8], strides = [1, 1, 1]} : vector<10x10x8xf32> to vector<8x8x8xf32>
    %21 = vector.extract_strided_slice %12 {offsets = [2, 2, 0], sizes = [8, 8, 8], strides = [1, 1, 1]} : vector<10x10x8xf32> to vector<8x8x8xf32>
    %22 = tpu.concatenate %13, %14, %15, %16, %17, %18, %19, %20, %21 in 2 : vector<8x8x8xf32>, vector<8x8x8xf32>, vector<8x8x8xf32>, vector<8x8x8xf32>, vector<8x8x8xf32>, vector<8x8x8xf32>, vector<8x8x8xf32>, vector<8x8x8xf32>, vector<8x8x8xf32> -> vector<8x8x72xf32>
    %23 = vector.shape_cast %22 : vector<8x8x72xf32> to vector<64x72xf32>
    %24 = arith.truncf %23 : vector<64x72xf32> to vector<64x72xbf16>
    %c0_7 = arith.constant 0 : index
    %c0_8 = arith.constant 0 : index
    %25 = vector.load %arg4[%c0_7, %c0_8] : memref<72x8xbf16, #tpu.memory_space<vmem>>, vector<72x8xbf16>
    %cst_9 = arith.constant dense<0.000000e+00> : vector<64x8xf32>
    %26 = tpu.matmul %24, %25, %cst_9 {dimension_numbers = #tpu.dot_dimension_numbers<[1], [0], [0], [1], [0, 0, 1, 1], [], []>} : vector<64x72xbf16>, vector<72x8xbf16>, vector<64x8xf32> -> vector<64x8xf32>
    %27 = vector.shape_cast %26 : vector<64x8xf32> to vector<1x8x8x8xf32>
    %28 = arith.truncf %27 : vector<1x8x8x8xf32> to vector<1x8x8x8xbf16>
    %c0_10 = arith.constant 0 : index
    %c0_11 = arith.constant 0 : index
    %c0_12 = arith.constant 0 : index
    %c0_13 = arith.constant 0 : index
    %29 = vector.load %arg5[%c0_10, %c0_11, %c0_12, %c0_13] : memref<1x8x8x8xbf16, #tpu.memory_space<vmem>>, vector<1x8x8x8xbf16>
    tpu.vector_store %arg5[%c0_10, %c0_11, %c0_12, %c0_13], %28 {strides = array<i32>} : memref<1x8x8x8xbf16, #tpu.memory_space<vmem>>, vector<1x8x8x8xbf16>,
    %cst_14 = arith.constant dense<0.000000e+00> : vector<8xf32>
    %30 = vector.multi_reduction <add>, %26, %cst_14 [0] : vector<64x8xf32> to vector<8xf32>
    %31 = vector.shape_cast %30 : vector<8xf32> to vector<1x8xf32>
    %32 = arith.mulf %26, %26 : vector<64x8xf32>
    %cst_15 = arith.constant dense<0.000000e+00> : vector<8xf32>
    %33 = vector.multi_reduction <add>, %32, %cst_15 [0] : vector<64x8xf32> to vector<8xf32>
    %34 = vector.shape_cast %33 : vector<8xf32> to vector<1x8xf32>
    %35 = tpu.concatenate %31, %34 in 0 : vector<1x8xf32>, vector<1x8xf32> -> vector<2x8xf32>
    %36 = vector.shape_cast %35 : vector<2x8xf32> to vector<1x2x8xf32>
    %c0_16 = arith.constant 0 : index
    %c0_17 = arith.constant 0 : index
    %c0_18 = arith.constant 0 : index
    %37 = vector.load %arg6[%c0_16, %c0_17, %c0_18] : memref<1x2x8xf32, #tpu.memory_space<vmem>>, vector<1x2x8xf32>
    tpu.vector_store %arg6[%c0_16, %c0_17, %c0_18], %36 {strides = array<i32>} : memref<1x2x8xf32, #tpu.memory_space<vmem>>, vector<1x2x8xf32>,
    return
  }
  func.func @transform_0(%arg0: i32) -> (i32, i32, i32, i32) {
    %c0_i32 = arith.constant 0 : i32
    %c0_i32_0 = arith.constant 0 : i32
    %c0_i32_1 = arith.constant 0 : i32
    %c0_i32_2 = arith.constant 0 : i32
    return %arg0, %c0_i32, %c0_i32_0, %c0_i32_1 : i32, i32, i32, i32
  }
  func.func @transform_1(%arg0: i32) -> (i32, i32) {
    %c0_i32 = arith.constant 0 : i32
    %c0_i32_0 = arith.constant 0 : i32
    %c0_i32_1 = arith.constant 0 : i32
    return %c0_i32, %c0_i32_0 : i32, i32
  }
  func.func @transform_2(%arg0: i32) -> (i32, i32) {
    %c0_i32 = arith.constant 0 : i32
    %c0_i32_0 = arith.constant 0 : i32
    %c0_i32_1 = arith.constant 0 : i32
    return %c0_i32, %c0_i32_0 : i32, i32
  }
  func.func @transform_3(%arg0: i32) -> (i32, i32) {
    %c0_i32 = arith.constant 0 : i32
    %c0_i32_0 = arith.constant 0 : i32
    %c0_i32_1 = arith.constant 0 : i32
    return %c0_i32, %c0_i32_0 : i32, i32
  }
  func.func @transform_4(%arg0: i32) -> (i32, i32, i32, i32) {
    %c0_i32 = arith.constant 0 : i32
    %c0_i32_0 = arith.constant 0 : i32
    %c0_i32_1 = arith.constant 0 : i32
    %c0_i32_2 = arith.constant 0 : i32
    return %arg0, %c0_i32, %c0_i32_0, %c0_i32_1 : i32, i32, i32, i32
  }
  func.func @transform_5(%arg0: i32) -> (i32, i32, i32) {
    %c0_i32 = arith.constant 0 : i32
    %c0_i32_0 = arith.constant 0 : i32
    %c0_i32_1 = arith.constant 0 : i32
    return %arg0, %c0_i32, %c0_i32_0 : i32, i32, i32
  }
}

module attributes {stable_mosaic.version = 11 : i64} {
  func.func @_bn_add_relu_kernel(%arg0: i32, %arg1: memref<128x32xbf16, #tpu.memory_space<vmem>>, %arg2: memref<128x32xf32, #tpu.memory_space<vmem>>, %arg3: memref<1x32xf32, #tpu.memory_space<vmem>>, %arg4: memref<1x32xf32, #tpu.memory_space<vmem>>, %arg5: memref<128x32xf32, #tpu.memory_space<vmem>>) attributes {dimension_semantics = [#tpu.dimension_semantics<parallel>], iteration_bounds = array<i64: 1>, scalar_prefetch = 0 : i64, scratch_operands = 0 : i64, tpu.core_type = #tpu.core_type<tc>, window_params = [{transform_indices = @transform_0, window_bounds = array<i64: 128, 32>}, {transform_indices = @transform_1, window_bounds = array<i64: 128, 32>}, {pipeline_mode = #tpu.pipeline_mode<synchronous>, transform_indices = @transform_2, window_bounds = array<i64: 1, 32>}, {pipeline_mode = #tpu.pipeline_mode<synchronous>, transform_indices = @transform_3, window_bounds = array<i64: 1, 32>}, {transform_indices = @transform_4, window_bounds = array<i64: 128, 32>}]} {
    %c0 = arith.constant 0 : index
    %c0_0 = arith.constant 0 : index
    %0 = vector.load %arg1[%c0, %c0_0] : memref<128x32xbf16, #tpu.memory_space<vmem>>, vector<128x32xbf16>
    %1 = arith.extf %0 : vector<128x32xbf16> to vector<128x32xf32>
    %c0_1 = arith.constant 0 : index
    %c0_2 = arith.constant 0 : index
    %2 = vector.load %arg3[%c0_1, %c0_2] : memref<1x32xf32, #tpu.memory_space<vmem>>, vector<1x32xf32>
    %3 = vector.broadcast %2 : vector<1x32xf32> to vector<128x32xf32>
    %4 = arith.mulf %1, %3 : vector<128x32xf32>
    %c0_3 = arith.constant 0 : index
    %c0_4 = arith.constant 0 : index
    %5 = vector.load %arg4[%c0_3, %c0_4] : memref<1x32xf32, #tpu.memory_space<vmem>>, vector<1x32xf32>
    %6 = vector.broadcast %5 : vector<1x32xf32> to vector<128x32xf32>
    %7 = arith.addf %4, %6 : vector<128x32xf32>
    %c0_5 = arith.constant 0 : index
    %c0_6 = arith.constant 0 : index
    %8 = vector.load %arg2[%c0_5, %c0_6] : memref<128x32xf32, #tpu.memory_space<vmem>>, vector<128x32xf32>
    %9 = arith.addf %7, %8 : vector<128x32xf32>
    %cst = arith.constant 0.000000e+00 : f32
    %10 = vector.broadcast %cst : f32 to vector<128x32xf32>
    %11 = arith.maximumf %9, %10 : vector<128x32xf32>
    %c0_7 = arith.constant 0 : index
    %c0_8 = arith.constant 0 : index
    %12 = vector.load %arg5[%c0_7, %c0_8] : memref<128x32xf32, #tpu.memory_space<vmem>>, vector<128x32xf32>
    tpu.vector_store %arg5[%c0_7, %c0_8], %11 {strides = array<i32>} : memref<128x32xf32, #tpu.memory_space<vmem>>, vector<128x32xf32>,
    return
  }
  func.func @transform_0(%arg0: i32) -> (i32, i32) {
    %c0_i32 = arith.constant 0 : i32
    %c0_i32_0 = arith.constant 0 : i32
    return %arg0, %c0_i32 : i32, i32
  }
  func.func @transform_1(%arg0: i32) -> (i32, i32) {
    %c0_i32 = arith.constant 0 : i32
    %c0_i32_0 = arith.constant 0 : i32
    return %arg0, %c0_i32 : i32, i32
  }
  func.func @transform_2(%arg0: i32) -> (i32, i32) {
    %c0_i32 = arith.constant 0 : i32
    %c0_i32_0 = arith.constant 0 : i32
    %c0_i32_1 = arith.constant 0 : i32
    return %c0_i32, %c0_i32_0 : i32, i32
  }
  func.func @transform_3(%arg0: i32) -> (i32, i32) {
    %c0_i32 = arith.constant 0 : i32
    %c0_i32_0 = arith.constant 0 : i32
    %c0_i32_1 = arith.constant 0 : i32
    return %c0_i32, %c0_i32_0 : i32, i32
  }
  func.func @transform_4(%arg0: i32) -> (i32, i32) {
    %c0_i32 = arith.constant 0 : i32
    %c0_i32_0 = arith.constant 0 : i32
    return %arg0, %c0_i32 : i32, i32
  }
}

</mosaic_0001>

<bundles_post_ra>
// kernel: bottleneck_forward.4
= control target key start
LH: loop header
LB: loop body
LE: loop exit
PB: predicated region body
PF: predicated region fallthrough
CT: control target
= control target key end

     0   :  { %9 = vsyncpa [#allocation3], 0  ;;  %s334_s15 = smov [#allocation2]   ;;  %s335_s17 = smov 128   ;;  %s508_s0 = inlined_call_operand.hbm [shape: f32[128,32], index: 0, kind: input, shape index: {}]   ;;  %s509_s1 = inlined_call_operand.vmem [shape: bf16[32,8], index: 1, kind: input, shape index: {}]   ;;  %s510_s2 = inlined_call_operand.vmem [shape: bf16[128,8], index: 2, kind: output, shape index: {0}]   ;;  %s511_s3 = inlined_call_operand.vmem [shape: f32[1,2,8], index: 3, kind: output, shape index: {1}]  }
   0x1   :  { %s14_s14 = sshll.u32 %s508_s0, 4  ;;  %s16_s16 = sshll.u32 %s334_s15, 4  ;;  %s15_s14 = int_to_ptr.hbm [resolvable:$true] %s14_s14  ;;  %s17_s16 = int_to_ptr.vmem [resolvable:$true] %s16_s16 }
   0x2   :  { %s336_s18 = smov 8  }
   0x3   :  { %22 = dma.hbm_to_vmem [thread:$0]  %s15_s14, 2048, %s17_s16, [#allocation3], %s335_s17, %s335_s17, %s336_s18  }
   0x4   :  { %332 = dma.done.wait [#allocation3], 2048  }
   0x5   :  { %333 = vsyncadd [#allocation3], 4294965248  ;;  %v298_v0 = vld [vmem:[%s509_s1 + $0x8] sm:$0xff]  ;;  %v297_v1 = vld [vmem:[%s509_s1] sm:$0xff]  ;;  %vm70_vm0 = vcmask 261120   ;;  %vm160_vm1 = vcmask 60416  }
   0x6   :  { %v30_v2 = vld [vmem:[#allocation2] sm:$0xff]  ;;  %v31_v3 = vld [vmem:[#allocation2 + $0x8] sm:$0xff]  ;;  %101 = vmatpush.bf16.msra.mxu0 %v298_v0  ;;  %299 = vmatpush.bf16.msra.mxu1 %v298_v0  ;;  %v32_v14 = vld [vmem:[#allocation2 + $0x10] sm:$0xff]  ;;  %vm177_vm2 = vcmask 64512   ;;  %vm268_vm3 = vcmask 1040384   ;;  %vm270_vm4 = vcmask 58368  }
   0x7   :  { %v34_v4 = vld [vmem:[#allocation2 + $0x20] sm:$0xff]  ;;  %v35_v5 = vld [vmem:[#allocation2 + $0x28] sm:$0xff]  ;;  %300 = vmatpush.bf16.msra.mxu2 %v298_v0  ;;  %301 = vmatpush.bf16.msra.mxu3 %v298_v0  ;;  %v46_v10 = vpack.c.bf16 %v31_v3, %v30_v2  ;;  %v33_v15 = vld [vmem:[#allocation2 + $0x18] sm:$0xff] }
   0x8   :  { %v38_v6 = vld [vmem:[#allocation2 + $0x40] sm:$0xff]  ;;  %v39_v7 = vld [vmem:[#allocation2 + $0x48] sm:$0xff]  ;;  %v48_v11 = vpack.c.bf16 %v35_v5, %v34_v4  ;;  %v36_v16 = vld [vmem:[#allocation2 + $0x30] sm:$0xff]  ;;  %v47_v22 = vpack.c.bf16 %v33_v15, %v32_v14 }
   0x9   :  { %v42_v8 = vld [vmem:[#allocation2 + $0x60] sm:$0xff]  ;;  %v43_v9 = vld [vmem:[#allocation2 + $0x68] sm:$0xff]  ;;  %v50_v12 = vpack.c.bf16 %v39_v7, %v38_v6  ;;  %v37_v17 = vld [vmem:[#allocation2 + $0x38] sm:$0xff] }
   0xa   :  { %102 = vmatpush.bf16.msra.mxu0 %v297_v1  ;;  %302 = vmatpush.bf16.msra.mxu1 %v297_v1  ;;  %v52_v13 = vpack.c.bf16 %v43_v9, %v42_v8  ;;  %v40_v18 = vld [vmem:[#allocation2 + $0x50] sm:$0xff]  ;;  %v41_v19 = vld [vmem:[#allocation2 + $0x58] sm:$0xff]  ;;  %v49_v23 = vpack.c.bf16 %v37_v17, %v36_v16 }
   0xb   :  { %303 = vmatpush.bf16.msra.mxu2 %v297_v1  ;;  %304 = vmatpush.bf16.msra.mxu3 %v297_v1  ;;  %v44_v20 = vld [vmem:[#allocation2 + $0x70] sm:$0xff]  ;;  %v45_v21 = vld [vmem:[#allocation2 + $0x78] sm:$0xff]  ;;  %v51_v24 = vpack.c.bf16 %v41_v19, %v40_v18 }
   0xc   :  { %v53_v25 = vpack.c.bf16 %v45_v21, %v44_v20 }
   0xd   :  { %289 = vmatmul.msk.bf16.vlgmr.msra.gmra.mxu0 %vm70_vm0, %v46_v10  ;;  %291 = vmatmul.msk.bf16.vlgmr.msra.gmra.mxu1 %vm70_vm0, %v48_v11 }
   0xe   :  { %293 = vmatmul.msk.bf16.vlgmr.msra.gmra.mxu2 %vm70_vm0, %v50_v12  ;;  %295 = vmatmul.msk.bf16.vlgmr.msra.gmra.mxu3 %vm70_vm0, %v52_v13 }
  0x1d   :  { %290 = vmatmul.msk.bf16.gmra.mxu0 %vm70_vm0, %v47_v22  ;;  %292 = vmatmul.msk.bf16.gmra.mxu1 %vm70_vm0, %v49_v23 }
  0x1e   :  { %294 = vmatmul.msk.bf16.gmra.mxu2 %vm70_vm0, %v51_v24  ;;  %296 = vmatmul.msk.bf16.gmra.mxu3 %vm70_vm0, %v53_v25 }
  0x8a   :  { %v104_v26 = vpop.f32.mrf.mxu0  ;;  %v114_v27 = vpop.f32.mrf.mxu1 }
  0x8b   :  { %v144_v28 = vpack.c.bf16 %v104_v26, %v104_v26  ;;  %v148_v29 = vpack.c.bf16 %v114_v27, %v114_v27  ;;  %v215_v47 = vmul.f32 %v104_v26, %v104_v26  ;;  %v178_v50 = vsel %vm177_vm2, %v104_v26, 0.0 }
  0x8c   :  { %v219_v55 = vmul.f32 %v114_v27, %v114_v27  ;;  %v185_v7 = vsel %vm177_vm2, %v114_v27, 0.0 }
  0x8d   :  { %161 = vst.msk [vmem:[%s510_s2] sm:$0xf] %vm160_vm1, %v144_v28  ;;  %v231_v54 = vsel %vm177_vm2, %v215_v47, 0.0 }
  0x8e   :  { %165 = vst.msk [vmem:[%s510_s2 + $0x10] sm:$0xf] %vm160_vm1, %v148_v29  ;;  %v238_v12 = vsel %vm177_vm2, %v219_v55, 0.0 }
  0x91   :  { %v382_v30 = vpop.f32.mrf.mxu2  ;;  %v384_v31 = vpop.f32.mrf.mxu3 }
  0x92   :  { %v106_v32 = vpop.f32.mrf.mxu0  ;;  %v116_v33 = vpop.f32.mrf.mxu1  ;;  %v152_v34 = vpack.c.bf16 %v382_v30, %v382_v30  ;;  %v156_v37 = vpack.c.bf16 %v384_v31, %v384_v31  ;;  %v223_v25 = vmul.f32 %v382_v30, %v382_v30 }
  0x93   :  { %v145_v35 = vpack.c.bf16 %v106_v32, %v106_v32  ;;  %v149_v36 = vpack.c.bf16 %v116_v33, %v116_v33  ;;  %v216_v43 = vmul.f32 %v106_v32, %v106_v32  ;;  %v179_v48 = vsel %vm177_vm2, %v106_v32, 0.0 }
  0x94   :  { %169 = vst.msk [vmem:[%s510_s2 + $0x20] sm:$0xf] %vm160_vm1, %v152_v34  ;;  %v180_v53 = vadd.f32 %v179_v48, %v178_v50  ;;  %v220_v8 = vmul.f32 %v116_v33, %v116_v33  ;;  %v187_v13 = vsel %vm177_vm2, %v116_v33, 0.0  ;;  %v193_v33 = vsel %vm177_vm2, %v382_v30, 0.0 }
  0x95   :  { %162 = vst.msk [vmem:[%s510_s2 + $0x4] sm:$0xf] %vm160_vm1, %v145_v35  ;;  %v232_v51 = vsel %vm177_vm2, %v216_v43, 0.0 }
  0x96   :  { %166 = vst.msk [vmem:[%s510_s2 + $0x14] sm:$0xf] %vm160_vm1, %v149_v36  ;;  %v233_v59 = vadd.f32 %v232_v51, %v231_v54  ;;  %v240_v17 = vsel %vm177_vm2, %v220_v8, 0.0 }
  0x97   :  { %173 = vst.msk [vmem:[%s510_s2 + $0x30] sm:$0xf] %vm160_vm1, %v156_v37 }
  0x99   :  { %v406_v38 = vpop.f32.mrf.mxu2  ;;  %v408_v39 = vpop.f32.mrf.mxu3 }
  0x9a   :  { %v109_v40 = vpop.f32.mrf.mxu0  ;;  %v119_v41 = vpop.f32.mrf.mxu1  ;;  %v153_v42 = vpack.c.bf16 %v406_v38, %v406_v38  ;;  %v157_v46 = vpack.c.bf16 %v408_v39, %v408_v39  ;;  %v224_v34 = vmul.f32 %v406_v38, %v406_v38  ;;  %v228_v54 = vmul.f32 %v408_v39, %v408_v39 }
  0x9b   :  { %v146_v44 = vpack.c.bf16 %v109_v40, %v109_v40  ;;  %v150_v45 = vpack.c.bf16 %v119_v41, %v119_v41  ;;  %v217_v49 = vmul.f32 %v109_v40, %v109_v40  ;;  %v181_v52 = vsel %vm177_vm2, %v109_v40, 0.0 }
  0x9c   :  { %170 = vst.msk [vmem:[%s510_s2 + $0x24] sm:$0xf] %vm160_vm1, %v153_v42  ;;  %v182_v60 = vadd.f32 %v181_v52, %v180_v53  ;;  %v221_v14 = vmul.f32 %v119_v41, %v119_v41  ;;  %v189_v18 = vsel %vm177_vm2, %v119_v41, 0.0  ;;  %v246_v40 = vsel %vm177_vm2, %v223_v25, 0.0 }
  0x9d   :  { %163 = vst.msk [vmem:[%s510_s2 + $0x8] sm:$0xf] %vm160_vm1, %v146_v44  ;;  %v234_v56 = vsel %vm177_vm2, %v217_v49, 0.0  ;;  %v195_v41 = vsel %vm177_vm2, %v406_v38, 0.0  ;;  %v248_v44 = vsel %vm177_vm2, %v224_v34, 0.0  ;;  %v227_v49 = vmul.f32 %v384_v31, %v384_v31 }
  0x9e   :  { %167 = vst.msk [vmem:[%s510_s2 + $0x18] sm:$0xf] %vm160_vm1, %v150_v45  ;;  %v235_v5 = vadd.f32 %v234_v56, %v233_v59  ;;  %v242_v26 = vsel %vm177_vm2, %v221_v14, 0.0  ;;  %v201_v38 = vsel %vm177_vm2, %v384_v31, 0.0 }
  0x9f   :  { %174 = vst.msk [vmem:[%s510_s2 + $0x34] sm:$0xf] %vm160_vm1, %v157_v46  ;;  %v254_v59 = vsel %vm177_vm2, %v227_v49, 0.0 }
  0xa1   :  { %v129_v57 = vpop.f32.mrf.mxu2  ;;  %v436_v58 = vpop.f32.mrf.mxu3 }
  0xa2   :  { %v111_v61 = vpop.f32.mrf.mxu0  ;;  %v121_v62 = vpop.f32.mrf.mxu1  ;;  %v154_v63 = vpack.c.bf16 %v129_v57, %v129_v57  ;;  %v158_v0 = vpack.c.bf16 %v436_v58, %v436_v58  ;;  %v225_v42 = vmul.f32 %v129_v57, %v129_v57  ;;  %v197_v45 = vsel %vm177_vm2, %v129_v57, 0.0 }
  0xa3   :  { %v147_v1 = vpack.c.bf16 %v111_v61, %v111_v61  ;;  %v183_v2 = vsel %vm177_vm2, %v111_v61, 0.0  ;;  %v218_v3 = vmul.f32 %v111_v61, %v111_v61  ;;  %v151_v4 = vpack.c.bf16 %v121_v62, %v121_v62 }
  0xa4   :  { %v184_v6 = vadd.f32 %v183_v2, %v182_v60  ;;  %171 = vst.msk [vmem:[%s510_s2 + $0x28] sm:$0xf] %vm160_vm1, %v154_v63  ;;  %v222_v19 = vmul.f32 %v121_v62, %v121_v62  ;;  %v191_v27 = vsel %vm177_vm2, %v121_v62, 0.0  ;;  %v250_v50 = vsel %vm177_vm2, %v225_v42, 0.0 }
  0xa5   :  { %164 = vst.msk [vmem:[%s510_s2 + $0xc] sm:$0xf] %vm160_vm1, %v147_v1  ;;  %v236_v9 = vsel %vm177_vm2, %v218_v3, 0.0  ;;  %v203_v60 = vsel %vm177_vm2, %v408_v39, 0.0  ;;  %v229_v61 = vmul.f32 %v436_v58, %v436_v58  ;;  %v205_v31 = vsel %vm177_vm2, %v436_v58, 0.0 }
  0xa6   :  { %v186_v10 = vadd.f32 %v185_v7, %v184_v6  ;;  %v237_v11 = vadd.f32 %v236_v9, %v235_v5  ;;  %168 = vst.msk [vmem:[%s510_s2 + $0x1c] sm:$0xf] %vm160_vm1, %v151_v4  ;;  %v244_v35 = vsel %vm177_vm2, %v222_v19, 0.0 }
  0xa7   :  { %175 = vst.msk [vmem:[%s510_s2 + $0x38] sm:$0xf] %vm160_vm1, %v158_v0  ;;  %v256_v0 = vsel %vm177_vm2, %v228_v54, 0.0  ;;  %v258_v4 = vsel %vm177_vm2, %v229_v61, 0.0 }
  0xa8   :  { %v239_v15 = vadd.f32 %v238_v12, %v237_v11  ;;  %v188_v16 = vadd.f32 %v187_v13, %v186_v10 }
  0xa9   :  { %v131_v20 = vpop.f32.mrf.mxu2  ;;  %v141_v21 = vpop.f32.mrf.mxu3 }
  0xaa   :  { %v190_v22 = vadd.f32 %v189_v18, %v188_v16  ;;  %v241_v23 = vadd.f32 %v240_v17, %v239_v15  ;;  %v155_v24 = vpack.c.bf16 %v131_v20, %v131_v20  ;;  %v159_v28 = vpack.c.bf16 %v141_v21, %v141_v21 }
  0xab   :  { %v226_v46 = vmul.f32 %v131_v20, %v131_v20  ;;  %v199_v51 = vsel %vm177_vm2, %v131_v20, 0.0  ;;  %v230_v1 = vmul.f32 %v141_v21, %v141_v21  ;;  %v207_v5 = vsel %vm177_vm2, %v141_v21, 0.0 }
  0xac   :  { %v192_v29 = vadd.f32 %v191_v27, %v190_v22  ;;  %v243_v32 = vadd.f32 %v242_v26, %v241_v23  ;;  %172 = vst.msk [vmem:[%s510_s2 + $0x2c] sm:$0xf] %vm160_vm1, %v155_v24 }
  0xad   :  { %176 = vst.msk [vmem:[%s510_s2 + $0x3c] sm:$0xf] %vm160_vm1, %v159_v28  ;;  %v252_v55 = vsel %vm177_vm2, %v226_v46, 0.0  ;;  %v260_v39 = vsel %vm177_vm2, %v230_v1, 0.0 }
  0xae   :  { %v194_v36 = vadd.f32 %v193_v33, %v192_v29  ;;  %v245_v37 = vadd.f32 %v244_v35, %v243_v32 }
  0xb0   :  { %v247_v43 = vadd.f32 %v246_v40, %v245_v37  ;;  %v196_v30 = vadd.f32 %v195_v41, %v194_v36 }
  0xb2   :  { %v198_v47 = vadd.f32 %v197_v45, %v196_v30  ;;  %v249_v48 = vadd.f32 %v248_v44, %v247_v43 }
  0xb4   :  { %v251_v52 = vadd.f32 %v250_v50, %v249_v48  ;;  %v200_v53 = vadd.f32 %v199_v51, %v198_v47 }
  0xb6   :  { %v202_v56 = vadd.f32 %v201_v38, %v200_v53  ;;  %v253_v57 = vadd.f32 %v252_v55, %v251_v52 }
  0xb8   :  { %v255_v62 = vadd.f32 %v254_v59, %v253_v57  ;;  %v204_v63 = vadd.f32 %v203_v60, %v202_v56 }
  0xba   :  { %v206_v2 = vadd.f32 %v205_v31, %v204_v63  ;;  %v257_v3 = vadd.f32 %v256_v0, %v255_v62 }
  0xbc   :  { %v259_v6 = vadd.f32 %v258_v4, %v257_v3  ;;  %v208_v7 = vadd.f32 %v207_v5, %v206_v2 }
  0xbe   :  { %v209_v8 = vrot.slane %v208_v7, 4  ;;  %v261_v9 = vadd.f32 %v260_v39, %v259_v6 }
  0xc0   :  { %v210_v10 = vadd.f32 %v209_v8, %v208_v7  ;;  %v262_v11 = vrot.slane %v261_v9, 4 }
  0xc2   :  { %v211_v12 = vrot.slane %v210_v10, 2  ;;  %v263_v13 = vadd.f32 %v262_v11, %v261_v9 }
  0xc4   :  { %v212_v14 = vadd.f32 %v211_v12, %v210_v10  ;;  %v264_v15 = vrot.slane %v263_v13, 2 }
  0xc6   :  { %v213_v58 = vrot.slane %v212_v14, 1  ;;  %v265_v16 = vadd.f32 %v264_v15, %v263_v13 }
  0xc8   :  { %v266_v17 = vrot.slane %v265_v16, 1  ;;  %v214_v18 = vadd.f32 %v213_v58, %v212_v14 }
  0xca   :  { %v267_v19 = vadd.f32 %v266_v17, %v265_v16 }
  0xcc   :  { %v269_v20 = vsel %vm268_vm3, %v214_v18, %v267_v19 }
  0xcd   :  { %271 = vst.msk [vmem:[%s511_s3] sm:$0x3] %vm270_vm4, %v269_v20 }
  0xce   :  { %280 = vsyncpa [#allocation3], 1 }

// kernel: bottleneck_forward.6
= control target key start
LH: loop header
LB: loop body
LE: loop exit
PB: predicated region body
PF: predicated region fallthrough
CT: control target
= control target key end

     0   :  { %vm142_vm0 = vcmask 1043456   ;;  %vm117_vm1 = vcmask 64512   ;;  %vm211_vm2 = vcmask 257024   ;;  %vm228_vm3 = vcmask 261120   ;;  %s624_s3 = inlined_call_operand.vmem [shape: bf16[8,32], index: 3, kind: input, shape index: {}]   ;;  %s625_s0 = inlined_call_operand.vmem [shape: bf16[128,8], index: 0, kind: input, shape index: {}]   ;;  %s626_s1 = inlined_call_operand.vmem [shape: f32[1,8], index: 1, kind: input, shape index: {}]   ;;  %s627_s2 = inlined_call_operand.vmem [shape: f32[1,8], index: 2, kind: input, shape index: {}]   ;;  %s628_s4 = inlined_call_operand.vmem [shape: bf16[128,32], index: 4, kind: output, shape index: {0}]   ;;  %s629_s5 = inlined_call_operand.vmem [shape: f32[1,2,32], index: 5, kind: output, shape index: {1}]  }
   0x1   :  { %v116_v0 = vld [vmem:[%s624_s3] sm:$0xf]  ;;  %v372_v6 = vld [vmem:[%s625_s0 + $0x10] sm:$0xff]   ;;  %v371_v28 = vld [vmem:[%s625_s0 + $0x8] sm:$0xff]   ;;  %vm319_vm4 = vcmask 1040384   ;;  %vm321_vm5 = vcmask 254976  }
   0x2   :  { %v340_v1 = vld [vmem:[%s625_s0] sm:$0xff]   ;;  %v144_v2 = vsel %vm142_vm0, %v116_v0, 0  ;;  %v349_v8 = vunpack.c.l.bf16 %v372_v6  ;;  %v350_v9 = vunpack.c.h.bf16 %v372_v6  ;;  %v376_v11 = vld [vmem:[%s625_s0 + $0x30] sm:$0xff]   ;;  %v373_v37 = vld [vmem:[%s625_s0 + $0x18] sm:$0xff]   ;;  %v345_v41 = vunpack.c.l.bf16 %v371_v28 }
   0x3   :  { %v341_v3 = vunpack.c.l.bf16 %v340_v1  ;;  %v342_v4 = vunpack.c.h.bf16 %v340_v1  ;;  %v422_v5 = vld [vmem:[%s626_s1] ss:$0 sm:$0xff]  ;;  %153 = vmatpush.bf16.msra.mxu0 %v144_v2  ;;  %378 = vmatpush.bf16.msra.mxu1 %v144_v2  ;;  %v365_v18 = vunpack.c.l.bf16 %v376_v11  ;;  %v366_v19 = vunpack.c.h.bf16 %v376_v11  ;;  %v375_v42 = vld [vmem:[%s625_s0 + $0x28] sm:$0xff]   ;;  %v377_v47 = vld [vmem:[%s625_s0 + $0x38] sm:$0xff]  }
   0x4   :  { %v430_v7 = vld [vmem:[%s627_s2] ss:$0 sm:$0xff]  ;;  %379 = vmatpush.bf16.msra.mxu2 %v144_v2  ;;  %380 = vmatpush.bf16.msra.mxu3 %v144_v2  ;;  %v60_v16 = vmul.f32 %v422_v5, %v349_v8  ;;  %v61_v17 = vmul.f32 %v422_v5, %v350_v9  ;;  %v346_v46 = vunpack.c.h.bf16 %v371_v28  ;;  %v58_v49 = vmul.f32 %v422_v5, %v345_v41 }
   0x5   :  { %v374_v10 = vld [vmem:[%s625_s0 + $0x20] sm:$0xff]   ;;  %v56_v12 = vmul.f32 %v422_v5, %v341_v3  ;;  %v57_v13 = vmul.f32 %v422_v5, %v342_v4  ;;  %v68_v26 = vmul.f32 %v422_v5, %v365_v18  ;;  %v69_v27 = vmul.f32 %v422_v5, %v366_v19 }
   0x6   :  { %v357_v14 = vunpack.c.l.bf16 %v374_v10  ;;  %v358_v15 = vunpack.c.h.bf16 %v374_v10  ;;  %v80_v24 = vadd.f32 %v430_v7, %v60_v16  ;;  %v81_v25 = vadd.f32 %v430_v7, %v61_v17 }
   0x7   :  { %v76_v20 = vadd.f32 %v430_v7, %v56_v12  ;;  %v77_v21 = vadd.f32 %v430_v7, %v57_v13  ;;  %v88_v35 = vadd.f32 %v430_v7, %v68_v26  ;;  %v89_v36 = vadd.f32 %v430_v7, %v69_v27 }
   0x8   :  { %v64_v22 = vmul.f32 %v422_v5, %v357_v14  ;;  %v65_v23 = vmul.f32 %v422_v5, %v358_v15  ;;  %v96_v33 = vmax.f32 %v80_v24, 0.0  ;;  %v97_v34 = vmax.f32 %v81_v25, 0.0 }
   0x9   :  { %v92_v29 = vmax.f32 %v76_v20, 0.0  ;;  %v93_v30 = vmax.f32 %v77_v21, 0.0  ;;  %v104_v44 = vmax.f32 %v88_v35, 0.0  ;;  %v105_v45 = vmax.f32 %v89_v36, 0.0 }
   0xa   :  { %v84_v31 = vadd.f32 %v430_v7, %v64_v22  ;;  %v85_v32 = vadd.f32 %v430_v7, %v65_v23  ;;  %v110_v43 = vpack.c.bf16 %v97_v34, %v96_v33  ;;  %v353_v50 = vunpack.c.l.bf16 %v373_v37 }
   0xb   :  { %v108_v38 = vpack.c.bf16 %v93_v30, %v92_v29  ;;  %v354_v51 = vunpack.c.h.bf16 %v373_v37  ;;  %v114_v52 = vpack.c.bf16 %v105_v45, %v104_v44  ;;  %v59_v53 = vmul.f32 %v422_v5, %v346_v46 }
   0xc   :  { %v100_v39 = vmax.f32 %v84_v31, 0.0  ;;  %v101_v40 = vmax.f32 %v85_v32, 0.0  ;;  %333 = vmatmul.msk.bf16.vlgmr.msra.gmra.mxu1 %vm117_vm1, %v110_v43  ;;  %v361_v54 = vunpack.c.l.bf16 %v375_v42  ;;  %v362_v55 = vunpack.c.h.bf16 %v375_v42 }
   0xd   :  { %331 = vmatmul.msk.bf16.vlgmr.msra.gmra.mxu0 %vm117_vm1, %v108_v38  ;;  %v62_v56 = vmul.f32 %v422_v5, %v353_v50  ;;  %v63_v57 = vmul.f32 %v422_v5, %v354_v51  ;;  %v369_v58 = vunpack.c.l.bf16 %v377_v47  ;;  %337 = vmatmul.msk.bf16.vlgmr.msra.gmra.mxu3 %vm117_vm1, %v114_v52  ;;  %v370_v61 = vunpack.c.h.bf16 %v377_v47 }
   0xe   :  { %v112_v48 = vpack.c.bf16 %v101_v40, %v100_v39  ;;  %v66_v59 = vmul.f32 %v422_v5, %v361_v54  ;;  %v67_v60 = vmul.f32 %v422_v5, %v362_v55  ;;  %v78_v62 = vadd.f32 %v430_v7, %v58_v49 }
   0xf   :  { %v79_v63 = vadd.f32 %v430_v7, %v59_v53  ;;  %v70_v0 = vmul.f32 %v422_v5, %v369_v58  ;;  %v82_v1 = vadd.f32 %v430_v7, %v62_v56  ;;  %v83_v2 = vadd.f32 %v430_v7, %v63_v57 }
  0x10   :  { %335 = vmatmul.msk.bf16.vlgmr.msra.gmra.mxu2 %vm117_vm1, %v112_v48  ;;  %v71_v3 = vmul.f32 %v422_v5, %v370_v61  ;;  %v86_v4 = vadd.f32 %v430_v7, %v66_v59  ;;  %v87_v6 = vadd.f32 %v430_v7, %v67_v60  ;;  %v94_v10 = vmax.f32 %v78_v62, 0.0 }
  0x11   :  { %v90_v8 = vadd.f32 %v430_v7, %v70_v0  ;;  %v95_v11 = vmax.f32 %v79_v63, 0.0  ;;  %v98_v12 = vmax.f32 %v82_v1, 0.0  ;;  %v99_v13 = vmax.f32 %v83_v2, 0.0 }
  0x12   :  { %v91_v9 = vadd.f32 %v430_v7, %v71_v3  ;;  %v102_v14 = vmax.f32 %v86_v4, 0.0  ;;  %v103_v15 = vmax.f32 %v87_v6, 0.0 }
  0x13   :  { %v106_v16 = vmax.f32 %v90_v8, 0.0  ;;  %v109_v18 = vpack.c.bf16 %v95_v11, %v94_v10  ;;  %v111_v19 = vpack.c.bf16 %v99_v13, %v98_v12 }
  0x14   :  { %v107_v17 = vmax.f32 %v91_v9, 0.0  ;;  %v113_v20 = vpack.c.bf16 %v103_v15, %v102_v14 }
  0x16   :  { %v115_v5 = vpack.c.bf16 %v107_v17, %v106_v16 }
  0x1c   :  { %334 = vmatmul.msk.bf16.gmra.mxu1 %vm117_vm1, %v111_v19 }
  0x1d   :  { %332 = vmatmul.msk.bf16.gmra.mxu0 %vm117_vm1, %v109_v18  ;;  %338 = vmatmul.msk.bf16.gmra.mxu3 %vm117_vm1, %v115_v5 }
  0x20   :  { %336 = vmatmul.msk.bf16.gmra.mxu2 %vm117_vm1, %v113_v20 }
  0x89   :  { %v165_v22 = vpop.f32.mrf.mxu1 }
  0x8a   :  { %v155_v7 = vpop.f32.mrf.mxu0  ;;  %v199_v23 = vpack.c.bf16 %v165_v22, %v165_v22  ;;  %v270_v50 = vmul.f32 %v165_v22, %v165_v22  ;;  %v236_v0 = vsel %vm228_vm3, %v165_v22, 0.0 }
  0x8b   :  { %v195_v21 = vpack.c.bf16 %v155_v7, %v155_v7  ;;  %v266_v40 = vmul.f32 %v155_v7, %v155_v7  ;;  %v229_v44 = vsel %vm228_vm3, %v155_v7, 0.0 }
  0x8c   :  { %216 = vst.msk [vmem:[%s628_s4 + $0x10] sm:$0xf] %vm211_vm2, %v199_v23  ;;  %v289_v8 = vsel %vm228_vm3, %v270_v50, 0.0 }
  0x8d   :  { %212 = vst.msk [vmem:[%s628_s4] sm:$0xf] %vm211_vm2, %v195_v21  ;;  %v282_v48 = vsel %vm228_vm3, %v266_v40, 0.0 }
  0x90   :  { %v502_v29 = vpop.f32.mrf.mxu3 }
  0x91   :  { %v167_v27 = vpop.f32.mrf.mxu1  ;;  %v207_v31 = vpack.c.bf16 %v502_v29, %v502_v29 }
  0x92   :  { %v157_v24 = vpop.f32.mrf.mxu0  ;;  %v200_v30 = vpack.c.bf16 %v167_v27, %v167_v27  ;;  %v271_v1 = vmul.f32 %v167_v27, %v167_v27  ;;  %v238_v9 = vsel %vm228_vm3, %v167_v27, 0.0 }
  0x93   :  { %v498_v25 = vpop.f32.mrf.mxu2  ;;  %v196_v26 = vpack.c.bf16 %v157_v24, %v157_v24  ;;  %224 = vst.msk [vmem:[%s628_s4 + $0x30] sm:$0xf] %vm211_vm2, %v207_v31  ;;  %v267_v34 = vmul.f32 %v157_v24, %v157_v24  ;;  %v230_v41 = vsel %vm228_vm3, %v157_v24, 0.0 }
  0x94   :  { %v203_v28 = vpack.c.bf16 %v498_v25, %v498_v25  ;;  %217 = vst.msk [vmem:[%s628_s4 + $0x14] sm:$0xf] %vm211_vm2, %v200_v30  ;;  %v231_v47 = vadd.f32 %v230_v41, %v229_v44  ;;  %v291_v13 = vsel %vm228_vm3, %v271_v1, 0.0  ;;  %v274_v19 = vmul.f32 %v498_v25, %v498_v25 }
  0x95   :  { %213 = vst.msk [vmem:[%s628_s4 + $0x4] sm:$0xf] %vm211_vm2, %v196_v26  ;;  %v283_v45 = vsel %vm228_vm3, %v267_v34, 0.0  ;;  %v244_v26 = vsel %vm228_vm3, %v498_v25, 0.0 }
  0x96   :  { %220 = vst.msk [vmem:[%s628_s4 + $0x20] sm:$0xf] %vm211_vm2, %v203_v28  ;;  %v284_v51 = vadd.f32 %v283_v45, %v282_v48 }
  0x98   :  { %v526_v38 = vpop.f32.mrf.mxu3 }
  0x99   :  { %v170_v36 = vpop.f32.mrf.mxu1  ;;  %v208_v43 = vpack.c.bf16 %v526_v38, %v526_v38  ;;  %v279_v48 = vmul.f32 %v526_v38, %v526_v38 }
  0x9a   :  { %v160_v32 = vpop.f32.mrf.mxu0  ;;  %v201_v39 = vpack.c.bf16 %v170_v36, %v170_v36  ;;  %v272_v10 = vmul.f32 %v170_v36, %v170_v36  ;;  %v240_v14 = vsel %vm228_vm3, %v170_v36, 0.0 }
  0x9b   :  { %v522_v33 = vpop.f32.mrf.mxu2  ;;  %v197_v35 = vpack.c.bf16 %v160_v32, %v160_v32  ;;  %v268_v42 = vmul.f32 %v160_v32, %v160_v32  ;;  %v232_v46 = vsel %vm228_vm3, %v160_v32, 0.0  ;;  %225 = vst.msk [vmem:[%s628_s4 + $0x34] sm:$0xf] %vm211_vm2, %v208_v43  ;;  %v297_v32 = vsel %vm228_vm3, %v274_v19, 0.0 }
  0x9c   :  { %v204_v37 = vpack.c.bf16 %v522_v33, %v522_v33  ;;  %218 = vst.msk [vmem:[%s628_s4 + $0x18] sm:$0xf] %vm211_vm2, %v201_v39  ;;  %v233_v52 = vadd.f32 %v232_v46, %v231_v47  ;;  %v293_v20 = vsel %vm228_vm3, %v272_v10, 0.0  ;;  %v275_v27 = vmul.f32 %v522_v33, %v522_v33 }
  0x9d   :  { %214 = vst.msk [vmem:[%s628_s4 + $0x8] sm:$0xf] %vm211_vm2, %v197_v35  ;;  %v285_v49 = vsel %vm228_vm3, %v268_v42, 0.0  ;;  %v246_v25 = vsel %vm228_vm3, %v522_v33, 0.0  ;;  %v278_v43 = vmul.f32 %v502_v29, %v502_v29  ;;  %v252_v33 = vsel %vm228_vm3, %v502_v29, 0.0 }
  0x9e   :  { %221 = vst.msk [vmem:[%s628_s4 + $0x24] sm:$0xf] %vm211_vm2, %v204_v37  ;;  %v286_v61 = vadd.f32 %v285_v49, %v284_v51  ;;  %v299_v37 = vsel %vm228_vm3, %v275_v27, 0.0 }
  0xa0   :  { %v553_v60 = vpop.f32.mrf.mxu3 }
  0xa1   :  { %v172_v58 = vpop.f32.mrf.mxu1  ;;  %v209_v3 = vpack.c.bf16 %v553_v60, %v553_v60  ;;  %v256_v29 = vsel %vm228_vm3, %v553_v60, 0.0 }
  0xa2   :  { %v162_v53 = vpop.f32.mrf.mxu0  ;;  %v202_v63 = vpack.c.bf16 %v172_v58, %v172_v58  ;;  %v273_v15 = vmul.f32 %v172_v58, %v172_v58  ;;  %v242_v5 = vsel %vm228_vm3, %v172_v58, 0.0 }
  0xa3   :  { %v180_v54 = vpop.f32.mrf.mxu2  ;;  %v198_v55 = vpack.c.bf16 %v162_v53, %v162_v53  ;;  %v234_v56 = vsel %vm228_vm3, %v162_v53, 0.0  ;;  %v269_v57 = vmul.f32 %v162_v53, %v162_v53  ;;  %226 = vst.msk [vmem:[%s628_s4 + $0x38] sm:$0xf] %vm211_vm2, %v209_v3  ;;  %v254_v53 = vsel %vm228_vm3, %v526_v38, 0.0 }
  0xa4   :  { %v205_v59 = vpack.c.bf16 %v180_v54, %v180_v54  ;;  %v235_v62 = vadd.f32 %v234_v56, %v233_v52  ;;  %219 = vst.msk [vmem:[%s628_s4 + $0x1c] sm:$0xf] %vm211_vm2, %v202_v63  ;;  %v295_v28 = vsel %vm228_vm3, %v273_v15, 0.0  ;;  %v276_v34 = vmul.f32 %v180_v54, %v180_v54 }
  0xa5   :  { %215 = vst.msk [vmem:[%s628_s4 + $0xc] sm:$0xf] %vm211_vm2, %v198_v55  ;;  %v287_v2 = vsel %vm228_vm3, %v269_v57, 0.0  ;;  %v248_v39 = vsel %vm228_vm3, %v180_v54, 0.0  ;;  %v305_v52 = vsel %vm228_vm3, %v278_v43, 0.0  ;;  %v280_v54 = vmul.f32 %v553_v60, %v553_v60 }
  0xa6   :  { %v237_v4 = vadd.f32 %v236_v0, %v235_v62  ;;  %v288_v6 = vadd.f32 %v287_v2, %v286_v61  ;;  %222 = vst.msk [vmem:[%s628_s4 + $0x28] sm:$0xf] %vm211_vm2, %v205_v59  ;;  %v301_v44 = vsel %vm228_vm3, %v276_v34, 0.0  ;;  %v307_v57 = vsel %vm228_vm3, %v279_v48, 0.0 }
  0xa7   :  { %v309_v62 = vsel %vm228_vm3, %v280_v54, 0.0 }
  0xa8   :  { %v290_v11 = vadd.f32 %v289_v8, %v288_v6  ;;  %v239_v12 = vadd.f32 %v238_v9, %v237_v4  ;;  %v192_v21 = vpop.f32.mrf.mxu3 }
  0xa9   :  { %v210_v24 = vpack.c.bf16 %v192_v21, %v192_v21  ;;  %v281_v58 = vmul.f32 %v192_v21, %v192_v21  ;;  %v258_v63 = vsel %vm228_vm3, %v192_v21, 0.0 }
  0xaa   :  { %v241_v16 = vadd.f32 %v240_v14, %v239_v12  ;;  %v292_v17 = vadd.f32 %v291_v13, %v290_v11 }
  0xab   :  { %v182_v18 = vpop.f32.mrf.mxu2  ;;  %227 = vst.msk [vmem:[%s628_s4 + $0x3c] sm:$0xf] %vm211_vm2, %v210_v24  ;;  %v311_v38 = vsel %vm228_vm3, %v281_v58, 0.0 }
  0xac   :  { %v206_v7 = vpack.c.bf16 %v182_v18, %v182_v18  ;;  %v243_v22 = vadd.f32 %v242_v5, %v241_v16  ;;  %v294_v23 = vadd.f32 %v293_v20, %v292_v17  ;;  %v277_v40 = vmul.f32 %v182_v18, %v182_v18 }
  0xad   :  { %v250_v45 = vsel %vm228_vm3, %v182_v18, 0.0 }
  0xae   :  { %223 = vst.msk [vmem:[%s628_s4 + $0x2c] sm:$0xf] %vm211_vm2, %v206_v7  ;;  %v245_v30 = vadd.f32 %v244_v26, %v243_v22  ;;  %v296_v31 = vadd.f32 %v295_v28, %v294_v23  ;;  %v303_v49 = vsel %vm228_vm3, %v277_v40, 0.0 }
  0xb0   :  { %v298_v35 = vadd.f32 %v297_v32, %v296_v31  ;;  %v247_v36 = vadd.f32 %v246_v25, %v245_v30 }
  0xb2   :  { %v249_v41 = vadd.f32 %v248_v39, %v247_v36  ;;  %v300_v42 = vadd.f32 %v299_v37, %v298_v35 }
  0xb4   :  { %v302_v46 = vadd.f32 %v301_v44, %v300_v42  ;;  %v251_v47 = vadd.f32 %v250_v45, %v249_v41 }
  0xb6   :  { %v253_v50 = vadd.f32 %v252_v33, %v251_v47  ;;  %v304_v51 = vadd.f32 %v303_v49, %v302_v46 }
  0xb8   :  { %v306_v55 = vadd.f32 %v305_v52, %v304_v51  ;;  %v255_v56 = vadd.f32 %v254_v53, %v253_v50 }
  0xba   :  { %v257_v59 = vadd.f32 %v256_v29, %v255_v56  ;;  %v308_v61 = vadd.f32 %v307_v57, %v306_v55 }
  0xbc   :  { %v310_v0 = vadd.f32 %v309_v62, %v308_v61  ;;  %v259_v1 = vadd.f32 %v258_v63, %v257_v59 }
  0xbe   :  { %v260_v2 = vrot.slane %v259_v1, 4  ;;  %v312_v3 = vadd.f32 %v311_v38, %v310_v0 }
  0xc0   :  { %v261_v4 = vadd.f32 %v260_v2, %v259_v1  ;;  %v313_v6 = vrot.slane %v312_v3, 4 }
  0xc2   :  { %v262_v8 = vrot.slane %v261_v4, 2  ;;  %v314_v9 = vadd.f32 %v313_v6, %v312_v3 }
  0xc4   :  { %v263_v10 = vadd.f32 %v262_v8, %v261_v4  ;;  %v315_v11 = vrot.slane %v314_v9, 2 }
  0xc6   :  { %v264_v60 = vrot.slane %v263_v10, 1  ;;  %v316_v12 = vadd.f32 %v315_v11, %v314_v9 }
  0xc8   :  { %v317_v13 = vrot.slane %v316_v12, 1  ;;  %v265_v14 = vadd.f32 %v264_v60, %v263_v10 }
  0xca   :  { %v318_v15 = vadd.f32 %v317_v13, %v316_v12 }
  0xcc   :  { %v320_v16 = vsel %vm319_vm4, %v265_v14, %v318_v15 }
  0xcd   :  { %322 = vst.msk [vmem:[%s629_s5] sm:$0x3] %vm321_vm5, %v320_v16 }

// kernel: bottleneck_forward.5
= control target key start
LH: loop header
LB: loop body
LE: loop exit
PB: predicated region body
PF: predicated region fallthrough
CT: control target
= control target key end

     0   :  { %s1210_s18 = smov 0   ;;  %s1625_s0 = inlined_call_operand.vmem [shape: bf16[2,10,10,8], index: 0, kind: input, shape index: {}]   ;;  %s1626_s1 = inlined_call_operand.vmem [shape: f32[1,8], index: 1, kind: input, shape index: {}]   ;;  %s1627_s2 = inlined_call_operand.vmem [shape: f32[1,8], index: 2, kind: input, shape index: {}]   ;;  %s1628_s3 = inlined_call_operand.vmem [shape: bf16[72,8], index: 3, kind: input, shape index: {}]   ;;  %s1629_s4 = inlined_call_operand.vmem [shape: bf16[2,8,8,8], index: 4, kind: output, shape index: {0}]   ;;  %s1630_s5 = inlined_call_operand.vmem [shape: f32[2,2,8], index: 5, kind: output, shape index: {1}]  }
   0x1 LB: > { %s934_s19 = sadd.s32 4294967295, %s1170_s18   ;;  %p938_p0 = scmp.ge.s32.totalorder %s1170_s18, 1  ;;  %s1170_s18 = sphi %s1210_s18, %s16_s18  }
   0x2   : > { %p190_p1 = scmp.lt.s32.totalorder %s1170_s18, 3 }
   0x4   : > { %p191_p2 = pnand %p938_p0, %p190_p1 }
   0x5   : > { %p222_p3 = scmp.lt.s32.totalorder (!%p191_p2), %s934_s19, 1  ;;  %s1172_s28 = smov (!%p191_p2), 24  }
   0x6   : > { %194 = sbr.rel (%p191_p2) target bundleno = 399 (0x18f), region = 36  ;;  %s1173_s29 = smov (!%p191_p2), 16  }
   0x7   : > { %s1174_s30 = smov (!%p191_p2), 32   ;;  %s1175_s6 = smov (!%p191_p2), 8  }
   0x8   : > { %s1176_s7 = smov (!%p191_p2), 40   ;;  %s1177_s8 = smov (!%p191_p2), 48  }
   0x9   : > { %s1178_s9 = smov (!%p191_p2), 64   ;;  %s1179_s10 = smov (!%p191_p2), 56  }
   0xb   : > { %s1632_s19 = smov (!%p222_p3, %s934_s19), 1  ;;  %v1229_v0 = vld [vmem:[%s1626_s1] ss:$0 sm:$0xff]  ;;  %vm410_vm0 = vcmask 1045504   ;;  %vm361_vm1 = vcmask 1046528   ;;  %vm744_vm2 = vcmask 1043456  }
   0xc   : > { %s985_s20 = smul.u32 80, %s1632_s19  ;;  %v1234_v1 = vld [vmem:[%s1627_s2] ss:$0 sm:$0xff]  ;;  %vm619_vm3 = vcmask 64512   ;;  %vm628_vm4 = vcmask 130048   ;;  %vm637_vm5 = vcmask 195584  }
   0xd   : > { %vm646_vm6 = vcmask 261120   ;;  %vm655_vm7 = vcmask 326656   ;;  %vm664_vm8 = vcmask 392192   ;;  %vm673_vm9 = vcmask 457728   ;;  %s942_s27 = sshll.u32 %s1632_s19, 1 }
   0xe   : > { %s1224_s23 = scalar_lea.vmem %s1625_s0, %s985_s20  ;;  %vm682_vm10 = vcmask 523264   ;;  %vm731_vm11 = vcmask 588800   ;;  %vm785_vm12 = vcmask 60416   ;;  %vm844_vm13 = vcmask 1040384  }
   0xf   : > { %v239_v2 = vld [vmem:[%s1224_s23 + $0x8] sm:$0xf]  ;;  %v241_v3 = vld [vmem:[%s1224_s23 + $0x10] sm:$0xf]  ;;  %v245_v4 = vld [vmem:[%s1224_s23 + $0x20] sm:$0xf] }
  0x10   : > { %v259_v5 = vunpack.c.l.bf16 %v239_v2  ;;  %v261_v6 = vunpack.c.l.bf16 %v241_v3  ;;  %v246_v7 = vld [vmem:[%s1224_s23 + $0x24] sm:$0x1]  ;;  %v247_v8 = vld [vmem:[%s1224_s23 + $0x28] sm:$0xf]  ;;  %v248_v9 = vld [vmem:[%s1224_s23 + $0x2c] sm:$0x1]  ;;  %v265_v10 = vunpack.c.l.bf16 %v245_v4 }
  0x11   : > { %v266_v11 = vunpack.c.l.bf16 %v246_v7  ;;  %v267_v12 = vunpack.c.l.bf16 %v247_v8  ;;  %v268_v13 = vunpack.c.l.bf16 %v248_v9  ;;  %v240_v14 = vld [vmem:[%s1224_s23 + $0xc] sm:$0x1]  ;;  %v242_v15 = vld [vmem:[%s1224_s23 + $0x14] sm:$0x1]  ;;  %v237_v36 = vld [vmem:[%s1224_s23] sm:$0xf] }
  0x12   : > { %v283_v16 = vmul.f32 %v1229_v0, %v259_v5  ;;  %v285_v17 = vmul.f32 %v1229_v0, %v261_v6  ;;  %v289_v18 = vmul.f32 %v1229_v0, %v265_v10  ;;  %v260_v19 = vunpack.c.l.bf16 %v240_v14  ;;  %v238_v41 = vld [vmem:[%s1224_s23 + $0x4] sm:$0x1]  ;;  %v249_v46 = vld [vmem:[%s1224_s23 + $0x30] sm:$0xf]  ;;  %v243_v4 = vld [vmem:[%s1224_s23 + $0x18] sm:$0xf] }
  0x13   : > { %v290_v20 = vmul.f32 %v1229_v0, %v266_v11  ;;  %v291_v21 = vmul.f32 %v1229_v0, %v267_v12  ;;  %v292_v22 = vmul.f32 %v1229_v0, %v268_v13  ;;  %v262_v23 = vunpack.c.l.bf16 %v242_v15  ;;  %v244_v11 = vld [vmem:[%s1224_s23 + $0x1c] sm:$0x1] }
  0x14   : > { %v307_v24 = vadd.f32 %v1234_v1, %v283_v16  ;;  %v309_v25 = vadd.f32 %v1234_v1, %v285_v17  ;;  %v313_v26 = vadd.f32 %v1234_v1, %v289_v18  ;;  %v284_v27 = vmul.f32 %v1229_v0, %v260_v19 }
  0x15   : > { %v314_v28 = vadd.f32 %v1234_v1, %v290_v20  ;;  %v315_v29 = vadd.f32 %v1234_v1, %v291_v21  ;;  %v316_v30 = vadd.f32 %v1234_v1, %v292_v22  ;;  %v286_v31 = vmul.f32 %v1229_v0, %v262_v23 }
  0x16   : > { %v1258_v32 = vmax.f32 %v307_v24, 0.0  ;;  %v1260_v33 = vmax.f32 %v309_v25, 0.0  ;;  %v1262_v34 = vmax.f32 %v313_v26, 0.0  ;;  %v308_v35 = vadd.f32 %v1234_v1, %v284_v27  ;;  %v250_v24 = vld [vmem:[%s1224_s23 + $0x34] sm:$0x1] }
  0x17   : > { %v334_v37 = vmax.f32 %v314_v28, 0.0  ;;  %v1266_v38 = vmax.f32 %v315_v29, 0.0  ;;  %v336_v39 = vmax.f32 %v316_v30, 0.0  ;;  %v310_v40 = vadd.f32 %v1234_v1, %v286_v31 }
  0x18   : > { %v1002_v42 = vpack.i.bf16 %v1260_v33, %v1258_v32  ;;  %v423_v43 = vrot.slane %v1262_v34, 2  ;;  %v328_v44 = vmax.f32 %v308_v35, 0.0  ;;  %v365_v45 = vrot.slane %v1258_v32, 1 }
  0x19   : > { %v424_v47 = vrot.slane %v334_v37, 2  ;;  %v426_v48 = vrot.slane %v1266_v38, 2  ;;  %v427_v49 = vrot.slane %v336_v39, 2  ;;  %v330_v50 = vmax.f32 %v310_v40, 0.0 }
  0x1a   : > { %1003 = vrot.lane.b32.xlu1 %v1002_v42, %s1172_s28  ;;  %v366_v51 = vrot.slane %v328_v44, 1  ;;  %v368_v52 = vrot.slane %v1260_v33, 1  ;;  %v257_v53 = vunpack.c.l.bf16 %v237_v36  ;;  %v258_v54 = vunpack.c.l.bf16 %v238_v41 }
  0x1b   : > { %v1279_v55 = vsel %vm410_vm0, %v423_v43, %v424_v47  ;;  %v1282_v56 = vsel %vm410_vm0, %v426_v48, %v427_v49  ;;  %v369_v57 = vrot.slane %v330_v50, 1  ;;  %v269_v58 = vunpack.c.l.bf16 %v249_v46  ;;  %v252_v49 = vld [vmem:[%s1224_s23 + $0x3c] sm:$0x1] }
  0x1c   : > { %v1286_v59 = vpack.i.bf16 %v1282_v56, %v1279_v55  ;;  %v281_v60 = vmul.f32 %v1229_v0, %v257_v53  ;;  %v282_v61 = vmul.f32 %v1229_v0, %v258_v54  ;;  %v367_v5 = vsel %vm361_vm1, %v365_v45, %v366_v51  ;;  %v251_v45 = vld [vmem:[%s1224_s23 + $0x38] sm:$0xf] }
  0x1d   : > { %v1291_v62 = vsel %vm361_vm1, %v368_v52, %v369_v57  ;;  %v293_v63 = vmul.f32 %v1229_v0, %v269_v58  ;;  %v414_v10 = vrot.slane %v1258_v32, 2  ;;  %v374_v13 = vrot.slane %v1262_v34, 1 }
  0x1e   : > { %1028 = vrot.lane.b32.xlu2 %v1286_v59, %s1173_s29  ;;  %v305_v2 = vadd.f32 %v1234_v1, %v281_v60  ;;  %v306_v3 = vadd.f32 %v1234_v1, %v282_v61  ;;  %v1032_v7 = vpack.i.bf16 %v1291_v62, %v367_v5  ;;  %v375_v14 = vrot.slane %v334_v37, 1 }
  0x1f   : > { %v317_v6 = vadd.f32 %v1234_v1, %v293_v63  ;;  %v263_v15 = vunpack.c.l.bf16 %v243_v4  ;;  %v377_v18 = vrot.slane %v1266_v38, 1  ;;  %v378_v19 = vrot.slane %v336_v39, 1 }
  0x20   : > { %v1302_v8 = vmax.f32 %v305_v2, 0.0  ;;  %v326_v9 = vmax.f32 %v306_v3, 0.0  ;;  %v417_v21 = vrot.slane %v1260_v33, 2  ;;  %v418_v22 = vrot.slane %v330_v50, 2 }
  0x21   : > { %v1306_v12 = vmax.f32 %v317_v6, 0.0  ;;  %v264_v23 = vunpack.c.l.bf16 %v244_v11  ;;  %v415_v28 = vrot.slane %v328_v44, 2  ;;  %v287_v30 = vmul.f32 %v1229_v0, %v263_v15 }
  0x22   : > { %v362_v16 = vrot.slane %v1302_v8, 1  ;;  %v363_v17 = vrot.slane %v326_v9, 1  ;;  %v411_v26 = vrot.slane %v1302_v8, 2  ;;  %v412_v27 = vrot.slane %v326_v9, 2 }
  0x23   : > { %v1007_v20 = vpack.i.bf16 %v1306_v12, %v1266_v38  ;;  %v288_v31 = vmul.f32 %v1229_v0, %v264_v23  ;;  %v1322_v35 = vsel %vm361_vm1, %v374_v13, %v375_v14  ;;  %v379_v36 = vsel %vm361_vm1, %v377_v18, %v378_v19 }
  0x24   : > { %v364_v25 = vsel %vm361_vm1, %v362_v16, %v363_v17  ;;  %v270_v37 = vunpack.c.l.bf16 %v250_v24  ;;  %v419_v39 = vsel %vm410_vm0, %v417_v21, %v418_v22  ;;  %v311_v40 = vadd.f32 %v1234_v1, %v287_v30  ;;  %v253_v17 = vld [vmem:[%s1224_s23 + $0x40] sm:$0xf]  ;;  %v254_v21 = vld [vmem:[%s1224_s23 + $0x44] sm:$0x1] }
  0x25   : > { %v1012_v29 = vpack.i.bf16 %v367_v5, %v364_v25  ;;  %1008 = vrot.lane.b32.xlu1 %v1007_v20, %s1172_s28  ;;  %v312_v41 = vadd.f32 %v1234_v1, %v288_v31  ;;  %v413_v42 = vsel %vm410_vm0, %v411_v26, %v412_v27  ;;  %v416_v43 = vsel %vm410_vm0, %v414_v10, %v415_v28 }
  0x26   : > { %1033 = vrot.lane.b32.xlu2 %v1032_v7, %s1174_s30  ;;  %v294_v44 = vmul.f32 %v1229_v0, %v270_v37  ;;  %v1334_v46 = vpack.i.bf16 %v379_v36, %v1322_v35  ;;  %v1336_v47 = vmax.f32 %v311_v40, 0.0  ;;  %v1042_v50 = vpack.i.bf16 %v419_v39, %v416_v43  ;;  %v255_v40 = vld [vmem:[%s1224_s23 + $0x48] sm:$0xf] }
  0x27   : > { %1013 = vrot.lane.b32.xlu0 %v1012_v29, %s1175_s6  ;;  %v332_v48 = vmax.f32 %v312_v41, 0.0  ;;  %v1017_v52 = vpack.i.bf16 %v416_v43, %v413_v42  ;;  %v380_v53 = vrot.slane %v1306_v12, 1  ;;  %v271_v54 = vunpack.c.l.bf16 %v251_v45 }
  0x28   : > { %v318_v51 = vadd.f32 %v1234_v1, %v294_v44  ;;  %v371_v57 = vrot.slane %v1336_v47, 1  ;;  %v272_v61 = vunpack.c.l.bf16 %v252_v49  ;;  %v1057_v7 = vpack.i.bf16 %v1336_v47, %v1260_v33 }
  0x29   : > { %v372_v58 = vrot.slane %v332_v48, 1  ;;  %v295_v4 = vmul.f32 %v1229_v0, %v271_v54  ;;  %v429_v10 = vrot.slane %v1306_v12, 2  ;;  %v420_v13 = vrot.slane %v1336_v47, 2 }
  0x2a   : > { %v338_v60 = vmax.f32 %v318_v51, 0.0  ;;  %v296_v5 = vmul.f32 %v1229_v0, %v272_v61  ;;  %v421_v14 = vrot.slane %v332_v48, 2  ;;  %v1067_v22 = vpack.i.bf16 %v1262_v34, %v1336_v47 }
  0x2b   : > { %v373_v2 = vsel %vm361_vm1, %v371_v57, %v372_v58  ;;  %v319_v15 = vadd.f32 %v1234_v1, %v295_v4  ;;  %v273_v26 = vunpack.c.l.bf16 %v253_v17  ;;  %v274_v28 = vunpack.c.l.bf16 %v254_v21 }
  0x2c   : > { %v381_v63 = vrot.slane %v338_v60, 1  ;;  %v1037_v9 = vpack.i.bf16 %v373_v2, %v1291_v62  ;;  %v430_v11 = vrot.slane %v338_v60, 2  ;;  %v320_v16 = vadd.f32 %v1234_v1, %v296_v5 }
  0x2d   : > { %1023 = vrot.lane.b32.xlu1 %v1334_v46, %s1175_s6  ;;  %v1363_v18 = vsel %vm410_vm0, %v420_v13, %v421_v14  ;;  %v1365_v19 = vmax.f32 %v319_v15, 0.0  ;;  %v1087_v41 = vpack.i.bf16 %v1322_v35, %v373_v2  ;;  %v275_v43 = vunpack.c.l.bf16 %v255_v40 }
  0x2e   : > { %1043 = vrot.lane.b32.xlu2 %v1042_v50, %s1176_s7  ;;  %v382_v3 = vsel %vm361_vm1, %v380_v53, %v381_v63  ;;  %v431_v62 = vsel %vm410_vm0, %v429_v10, %v430_v11  ;;  %v340_v20 = vmax.f32 %v320_v16, 0.0  ;;  %v1047_v27 = vpack.i.bf16 %v1363_v18, %v419_v39 }
  0x2f   : > { %1018 = vrot.lane.b32.xlu0 %v1017_v52, %s1173_s29  ;;  %v1052_v6 = vpack.i.bf16 %v382_v3, %v379_v36  ;;  %v1072_v23 = vpack.i.bf16 %v431_v62, %v1282_v56  ;;  %v432_v24 = vrot.slane %v1365_v19, 2  ;;  %v383_v29 = vrot.slane %v1365_v19, 1  ;;  %v256_v52 = vld [vmem:[%s1224_s23 + $0x4c] sm:$0x1]  ;;  %s965_s23 = sshll.u32 %s1632_s19, 5 }
  0x30   : > { %v433_v25 = vrot.slane %v340_v20, 2  ;;  %v384_v30 = vrot.slane %v340_v20, 1  ;;  %v297_v36 = vmul.f32 %v1229_v0, %v273_v26  ;;  %v298_v56 = vmul.f32 %v1229_v0, %v274_v28  ;;  %v968_v28 = vld [vmem:[%s1628_s3 + $0x10] sm:$0xff]  ;;  %s1584_s26 = scalar_lea.vmem %s1629_s4, %s965_s23 }
  0x31   : > { %v299_v48 = vmul.f32 %v1229_v0, %v275_v43  ;;  %v276_v53 = vunpack.c.l.bf16 %v256_v52  ;;  %v1107_v16 = vpack.i.bf16 %v1279_v55, %v1363_v18  ;;  %v1122_v17 = vpack.i.bf16 %v1266_v38, %v1262_v34 }
  0x32   : > { %v434_v31 = vsel %vm410_vm0, %v432_v24, %v433_v25  ;;  %v385_v37 = vsel %vm361_vm1, %v383_v29, %v384_v30  ;;  %v321_v42 = vadd.f32 %v1234_v1, %v297_v36  ;;  %v322_v45 = vadd.f32 %v1234_v1, %v298_v56  ;;  %v966_v56 = vld [vmem:[%s1628_s3] sm:$0xff] }
  0x33   : > { %v1082_v39 = vpack.i.bf16 %v434_v31, %v431_v62  ;;  %v1062_v44 = vpack.i.bf16 %v385_v37, %v382_v3  ;;  %v323_v50 = vadd.f32 %v1234_v1, %v299_v48  ;;  %v300_v58 = vmul.f32 %v1229_v0, %v276_v53 }
  0x34   : > { %v341_v49 = vmax.f32 %v321_v42, 0.0  ;;  %v342_v51 = vmax.f32 %v322_v45, 0.0  ;;  %v1092_v0 = vpack.i.bf16 %v1365_v19, %v1306_v12  ;;  %vm846_vm14 = vcmask 58368  }
  0x35   : > { %1053 = vrot.lane.b32.xlu1 %v1052_v6, %s1174_s30  ;;  %v343_v60 = vmax.f32 %v323_v50, 0.0  ;;  %v324_v61 = vadd.f32 %v1234_v1, %v300_v58 }
  0x36   : > { %1058 = vrot.lane.b32.xlu2 %v1057_v7, %s1177_s8  ;;  %v1102_v35 = vpack.i.bf16 %v341_v49, %v1365_v19  ;;  %v485_v54 = vrot.slane %v341_v49, 1  ;;  %v486_v57 = vrot.slane %v342_v51, 1  ;;  %v512_v4 = vrot.slane %v341_v49, 2 }
  0x37   : > { %1038 = vrot.lane.b32.xlu0 %v1037_v9, %s1175_s6  ;;  %v344_v2 = vmax.f32 %v324_v61, 0.0  ;;  %v565_v3 = vrot.slane %v343_v60, 1  ;;  %v513_v5 = vrot.slane %v342_v51, 2  ;;  %v592_v10 = vrot.slane %v343_v60, 2 }
  0x38   : > { %v487_v63 = vsel %vm361_vm1, %v485_v54, %v486_v57  ;;  %v1142_v62 = vpack.i.bf16 %v343_v60, %v341_v49 }
  0x39   : > { %v1117_v6 = vpack.i.bf16 %v487_v63, %v385_v37  ;;  %v566_v7 = vrot.slane %v344_v2, 1  ;;  %v593_v11 = vrot.slane %v344_v2, 2  ;;  %v514_v1 = vsel %vm410_vm0, %v512_v4, %v513_v5 }
  0x3a   : > { %v1132_v15 = vpack.i.bf16 %v514_v1, %v434_v31  ;;  %v967_v31 = vld [vmem:[%s1628_s3 + $0x8] sm:$0xff] }
  0x3b   : > { %v567_v13 = vsel %vm361_vm1, %v565_v3, %v566_v7 }
  0x3c   : > { %v1152_v55 = vpack.i.bf16 %v567_v13, %v487_v63 }
  0x3d   : > { %1068 = vrot.lane.b32.xlu1 %v1067_v22, %s1172_s28 }
  0x3e   : > { %1073 = vrot.lane.b32.xlu2 %v1072_v23, %s1176_s7 }
  0x3f   : > { %1048 = vrot.lane.b32.xlu0 %v1047_v27, %s1173_s29 }
  0x45   : > { %1083 = vrot.lane.b32.xlu1 %v1082_v39, %s1173_s29 }
  0x46   : > { %1088 = vrot.lane.b32.xlu2 %v1087_v41, %s1174_s30 }
  0x47   : > { %1063 = vrot.lane.b32.xlu0 %v1062_v44, %s1175_s6 }
  0x4d   : > { %1098 = vrot.lane.b32.xlu1 %v1047_v27, %s1178_s9  ;;  %v969_v27 = vld [vmem:[%s1628_s3 + $0x18] sm:$0xff] }
  0x4e   : > { %1103 = vrot.lane.b32.xlu2 %v1102_v35, %s1172_s28 }
  0x4f   : > { %1078 = vrot.lane.b32.xlu0 %v1037_v9, %s1179_s10  ;;  %v594_v9 = vsel %vm410_vm0, %v592_v10, %v593_v11 }
  0x50   : > { %v1157_v14 = vpack.i.bf16 %v594_v9, %v514_v1 }
  0x55   : > { %1113 = vrot.lane.b32.xlu1 %v1062_v44, %s1179_s10 }
  0x56   : > { %1118 = vrot.lane.b32.xlu2 %v1117_v6, %s1174_s30  ;;  %s235_s30 = scalar_lea.vmem %s1630_s5, %s942_s27 }
  0x57   : > { %1093 = vrot.lane.b32.xlu0 %v1092_v0, %s1177_s8 }
  0x5d   : > { %1128 = vrot.lane.b32.xlu1 %v1082_v39, %s1178_s9 }
  0x5e   : > { %1133 = vrot.lane.b32.xlu2 %v1132_v15, %s1176_s7 }
  0x5f   : > { %1108 = vrot.lane.b32.xlu0 %v1107_v16, %s1176_s7 }
  0x65   : > { %1143 = vrot.lane.b32.xlu1 %v1142_v62, %s1177_s8 }
  0x66   : > { %1148 = vrot.lane.b32.xlu2 %v1286_v59, %s1178_s9  ;;  %v703_v59 = vld [vmem:[%s1628_s3 + $0x20] sm:$0xf] }
  0x67   : > { %1123 = vrot.lane.b32.xlu0 %v1122_v17, %s1177_s8  ;;  %v721_v22 = vunpack.c.l.b16 %v703_v59 }
  0x69   : > { %v726_v23 = vpack.c.b16 %v721_v22, %v721_v22 }
  0x6b   : > { %v746_v25 = vsel %vm744_vm2, %v726_v23, 0 }
  0x6c   : > { %751 = vmatpush.bf16.msra.mxu0 %v746_v25  ;;  %971 = vmatpush.bf16.msra.mxu2 %v746_v25 }
  0x6d   : > { %1158 = vrot.lane.b32.xlu1 %v1157_v14, %s1178_s9  ;;  %970 = vmatpush.bf16.msra.mxu1 %v746_v25 }
  0x6e   : > { %972 = vmatpush.bf16.msra.mxu3 %v746_v25 }
  0x6f   : > { %1138 = vrot.lane.b32.xlu0 %v1334_v46, %s1179_s10 }
  0x70   : > { %752 = vmatpush.bf16.msra.mxu0 %v969_v27  ;;  %974 = vmatpush.bf16.msra.mxu2 %v969_v27 }
  0x71   : > { %973 = vmatpush.bf16.msra.mxu1 %v969_v27 }
  0x72   : > { %975 = vmatpush.bf16.msra.mxu3 %v969_v27 }
  0x74   : > { %753 = vmatpush.bf16.msra.mxu0 %v968_v28  ;;  %977 = vmatpush.bf16.msra.mxu2 %v968_v28 }
  0x75   : > { %976 = vmatpush.bf16.msra.mxu1 %v968_v28 }
  0x76   : > { %978 = vmatpush.bf16.msra.mxu3 %v968_v28 }
  0x77   : > { %1153 = vrot.lane.b32.xlu0 %v1152_v55, %s1179_s10 }
  0x78   : > { %v1421_v18 = vpop.permute.xlu2 %1028  ;;  %754 = vmatpush.bf16.msra.mxu0 %v967_v31  ;;  %980 = vmatpush.bf16.msra.mxu2 %v967_v31 }
  0x79   : > { %979 = vmatpush.bf16.msra.mxu1 %v967_v31 }
  0x7a   : > { %981 = vmatpush.bf16.msra.mxu3 %v967_v31 }
  0x7c   : > { %755 = vmatpush.bf16.msra.mxu0 %v966_v56  ;;  %983 = vmatpush.bf16.msra.mxu2 %v966_v56 }
  0x7d   : > { %982 = vmatpush.bf16.msra.mxu1 %v966_v56 }
  0x7e   : > { %984 = vmatpush.bf16.msra.mxu3 %v966_v56 }
  0x80   : > { %v1425_v21 = vpop.permute.xlu2 %1033 }
  0x81   : > { %v1036_v58 = vunpack.i.h.bf16 %v1425_v21 }
  0x88   : > { %v1432_v26 = vpop.permute.xlu2 %1043 }
  0x89   : > { %v1046_v63 = vunpack.i.h.bf16 %v1432_v26  ;;  %v1045_v2 = vunpack.i.l.bf16 %v1432_v26  ;;  %v1030_v26 = vunpack.i.l.bf16 %v1421_v18 }
  0x8c   : > { %v1423_v20 = vpop.permute.xlu1 %1003 }
  0x8d   : > { %v1006_v53 = vunpack.i.h.bf16 %v1423_v20  ;;  %v1005_v54 = vunpack.i.l.bf16 %v1423_v20 }
  0x90   : > { %v1059_v36 = vpop.permute.xlu2 %1058 }
  0x91   : > { %v1061_v5 = vunpack.i.h.bf16 %v1059_v36  ;;  %v1060_v6 = vunpack.i.l.bf16 %v1059_v36 }
  0x97   : > { %v1430_v24 = vpop.permute.xlu1 %1008 }
  0x98   : > { %v1452_v40 = vpop.permute.xlu2 %1073  ;;  %v1010_v36 = vunpack.i.l.bf16 %v1430_v24 }
  0x99   : > { %v1014_v46 = vpop.permute.xlu0 %1013 }
  0x9a   : > { %v1016_v43 = vunpack.i.h.bf16 %v1014_v46  ;;  %v1015_v44 = vunpack.i.l.bf16 %v1014_v46  ;;  %v1031_v46 = vunpack.i.h.bf16 %v1421_v18  ;;  %v1075_v18 = vunpack.i.l.bf16 %v1452_v40 }
  0x9c   : > { %v621_v49 = vsel %vm619_vm3, %v1258_v32, %v1016_v43  ;;  %v620_v50 = vsel %vm619_vm3, %v1302_v8, %v1015_v44  ;;  %v1035_v32 = vunpack.i.l.bf16 %v1425_v21  ;;  %v1076_v43 = vunpack.i.h.bf16 %v1452_v40 }
  0x9f   : > { %v1440_v29 = vpop.permute.xlu1 %1023 }
  0xa0   : > { %v1468_v57 = vpop.permute.xlu2 %1088  ;;  %v1026_v0 = vunpack.i.h.bf16 %v1440_v29  ;;  %v1025_v13 = vunpack.i.l.bf16 %v1440_v29 }
  0xa1   : > { %v1019_v30 = vpop.permute.xlu0 %1018 }
  0xa2   : > { %v1021_v45 = vunpack.i.h.bf16 %v1019_v30  ;;  %v1020_v48 = vunpack.i.l.bf16 %v1019_v30  ;;  %v625_v20 = vsel %vm619_vm3, %v1266_v38, %v1026_v0  ;;  %v624_v22 = vsel %vm619_vm3, %v1262_v34, %v1025_v13 }
  0xa3   : > { %v634_v38 = vsel %vm628_vm4, %v625_v20, %v1031_v46  ;;  %v633_v29 = vsel %vm628_vm4, %v624_v22, %v1030_v26  ;;  %v1011_v34 = vunpack.i.h.bf16 %v1430_v24 }
  0xa4   : > { %v629_v51 = vsel %vm628_vm4, %v620_v50, %v1020_v48  ;;  %v630_v52 = vsel %vm628_vm4, %v621_v49, %v1021_v45  ;;  %v642_v44 = vsel %vm637_vm5, %v633_v29, %v1010_v36 }
  0xa5   : > { %v638_v8 = vsel %vm637_vm5, %v629_v51, %v1005_v54  ;;  %v639_v61 = vsel %vm637_vm5, %v630_v52, %v1006_v53  ;;  %v643_v45 = vsel %vm637_vm5, %v634_v38, %v1011_v34 }
  0xa6   : > { %v647_v3 = vsel %vm646_vm6, %v638_v8, %v1035_v32  ;;  %v648_v4 = vsel %vm646_vm6, %v639_v61, %v1036_v58 }
  0xa7   : > { %v1448_v37 = vpop.permute.xlu1 %1053  ;;  %v656_v10 = vsel %vm655_vm7, %v647_v3, %v1045_v2  ;;  %v657_v11 = vsel %vm655_vm7, %v648_v4, %v1046_v63 }
  0xa8   : > { %v1484_v15 = vpop.permute.xlu2 %1103  ;;  %v665_v17 = vsel %vm664_vm8, %v656_v10, %v1060_v6  ;;  %v666_v55 = vsel %vm664_vm8, %v657_v11, %v1061_v5  ;;  %v1056_v30 = vunpack.i.h.bf16 %v1448_v37  ;;  %v1055_v31 = vunpack.i.l.bf16 %v1448_v37 }
  0xa9   : > { %v1450_v39 = vpop.permute.xlu0 %1038  ;;  %v1106_v46 = vunpack.i.h.bf16 %v1484_v15  ;;  %v1105_v26 = vunpack.i.l.bf16 %v1484_v15 }
  0xaa   : > { %v651_v48 = vsel %vm646_vm6, %v642_v44, %v1055_v31  ;;  %v652_v49 = vsel %vm646_vm6, %v643_v45, %v1056_v30  ;;  %v1041_v0 = vunpack.i.h.bf16 %v1450_v39  ;;  %v1040_v10 = vunpack.i.l.bf16 %v1450_v39 }
  0xab   : > { %v660_v24 = vsel %vm655_vm7, %v651_v48, %v1075_v18  ;;  %v661_v54 = vsel %vm655_vm7, %v652_v49, %v1076_v43 }
  0xaf   : > { %v1454_v41 = vpop.permute.xlu1 %1068 }
  0xb0   : > { %v1511_v37 = vpop.permute.xlu2 %1118 }
  0xb1   : > { %v1456_v42 = vpop.permute.xlu0 %1048  ;;  %v1121_v44 = vunpack.i.h.bf16 %v1511_v37 }
  0xb2   : > { %v1051_v11 = vunpack.i.h.bf16 %v1456_v42  ;;  %v1050_v13 = vunpack.i.l.bf16 %v1456_v42 }
  0xb7   : > { %v1464_v35 = vpop.permute.xlu1 %1083 }
  0xb8   : > { %v1085_v22 = vunpack.i.l.bf16 %v1464_v35 }
  0xb9   : > { %v1472_v60 = vpop.permute.xlu0 %1063 }
  0xba   : > { %v1066_v42 = vunpack.i.h.bf16 %v1472_v60 }
  0xbf   : > { %v1099_v7 = vpop.permute.xlu1 %1098 }
  0xc0   : > { %v1101_v9 = vunpack.i.h.bf16 %v1099_v7  ;;  %v1100_v14 = vunpack.i.l.bf16 %v1099_v7  ;;  %v1522_v7 = vpop.permute.xlu2 %1133 }
  0xc1   : > { %v1079_v1 = vpop.permute.xlu0 %1078 }
  0xc2   : > { %v1081_v16 = vunpack.i.h.bf16 %v1079_v1  ;;  %v1080_v62 = vunpack.i.l.bf16 %v1079_v1  ;;  %v1071_v1 = vunpack.i.h.bf16 %v1454_v41 }
  0xc4   : > { %v674_v21 = vsel %vm673_vm9, %v665_v17, %v1080_v62  ;;  %v675_v59 = vsel %vm673_vm9, %v666_v55, %v1081_v16  ;;  %v1091_v16 = vunpack.i.h.bf16 %v1468_v57  ;;  %v1090_v62 = vunpack.i.l.bf16 %v1468_v57 }
  0xc5   : > { %v683_v23 = vsel %vm682_vm10, %v674_v21, %v1100_v14  ;;  %v684_v25 = vsel %vm682_vm10, %v675_v59, %v1101_v9  ;;  %v1070_v9 = vunpack.i.l.bf16 %v1454_v41  ;;  %v623_v17 = vsel %vm619_vm3, %v1336_v47, %v1041_v0 }
  0xc6   : > { %v691_v27 = vpack.c.bf16 %v684_v25, %v683_v23  ;;  %v622_v55 = vsel %vm619_vm3, %v1260_v33, %v1040_v10  ;;  %v632_v20 = vsel %vm628_vm4, %v623_v17, %v1051_v11  ;;  %v1065_v21 = vunpack.i.l.bf16 %v1472_v60 }
  0xc7   : > { %v1114_v28 = vpop.permute.xlu1 %1113  ;;  %v631_v39 = vsel %vm628_vm4, %v622_v55, %v1050_v13  ;;  %v641_v59 = vsel %vm637_vm5, %v632_v20, %v1071_v1  ;;  %v1086_v57 = vunpack.i.h.bf16 %v1464_v35  ;;  %v627_v60 = vsel %vm619_vm3, %v1365_v19, %v1066_v42 }
  0xc8   : > { %959 = vmatmul.msk.bf16.vlgmr.msra.gmra.mxu0 %vm731_vm11, %v691_v27  ;;  %v1116_v52 = vunpack.i.h.bf16 %v1114_v28  ;;  %v1115_v53 = vunpack.i.l.bf16 %v1114_v28  ;;  %v640_v41 = vsel %vm637_vm5, %v631_v39, %v1070_v9  ;;  %v1149_v33 = vpop.permute.xlu2 %1148  ;;  %v626_v38 = vsel %vm619_vm3, %v1306_v12, %v1065_v21 }
  0xc9   : > { %v1094_v56 = vpop.permute.xlu0 %1093  ;;  %v649_v29 = vsel %vm646_vm6, %v640_v41, %v1090_v62  ;;  %v650_v35 = vsel %vm646_vm6, %v641_v59, %v1091_v16  ;;  %v635_v30 = vsel %vm628_vm4, %v626_v38, %v1085_v22  ;;  %v636_v31 = vsel %vm628_vm4, %v627_v60, %v1086_v57 }
  0xca   : > { %v1096_v50 = vunpack.i.h.bf16 %v1094_v56  ;;  %v1095_v51 = vunpack.i.l.bf16 %v1094_v56  ;;  %v1151_v36 = vunpack.i.h.bf16 %v1149_v33  ;;  %v1150_v56 = vunpack.i.l.bf16 %v1149_v33 }
  0xcb   : > { %v1120_v12 = vunpack.i.l.bf16 %v1511_v37  ;;  %v644_v49 = vsel %vm637_vm5, %v635_v30, %v1105_v26  ;;  %v1135_v37 = vunpack.i.l.bf16 %v1522_v7 }
  0xcc   : > { %v670_v40 = vsel %vm664_vm8, %v661_v54, %v1096_v50  ;;  %v669_v32 = vsel %vm664_vm8, %v660_v24, %v1095_v51  ;;  %v645_v50 = vsel %vm637_vm5, %v636_v31, %v1106_v46  ;;  %v1136_v54 = vunpack.i.h.bf16 %v1522_v7 }
  0xcd   : > { %v678_v63 = vsel %vm673_vm9, %v669_v32, %v1115_v53  ;;  %v679_v2 = vsel %vm673_vm9, %v670_v40, %v1116_v52  ;;  %v653_v32 = vsel %vm646_vm6, %v644_v49, %v1120_v12 }
  0xcf   : > { %v1129_v58 = vpop.permute.xlu1 %1128 }
  0xd0   : > { %v1131_v8 = vunpack.i.h.bf16 %v1129_v58  ;;  %v1130_v61 = vunpack.i.l.bf16 %v1129_v58 }
  0xd1   : > { %v1109_v3 = vpop.permute.xlu0 %1108 }
  0xd2   : > { %v687_v4 = vsel %vm682_vm10, %v678_v63, %v1130_v61  ;;  %v688_v5 = vsel %vm682_vm10, %v679_v2, %v1131_v8  ;;  %v1111_v47 = vunpack.i.h.bf16 %v1109_v3  ;;  %v1110_v23 = vunpack.i.l.bf16 %v1109_v3 }
  0xd3   : > { %v693_v6 = vpack.c.bf16 %v688_v5, %v687_v4  ;;  %v654_v8 = vsel %vm646_vm6, %v645_v50, %v1121_v44  ;;  %v662_v5 = vsel %vm655_vm7, %v653_v32, %v1135_v37 }
  0xd4   : > { %v658_v15 = vsel %vm655_vm7, %v649_v29, %v1110_v23  ;;  %v659_v43 = vsel %vm655_vm7, %v650_v35, %v1111_v47 }
  0xd5   : > { %961 = vmatmul.msk.bf16.vlgmr.msra.gmra.mxu2 %vm731_vm11, %v693_v6  ;;  %v663_v6 = vsel %vm655_vm7, %v654_v8, %v1136_v54 }
  0xd7   : > { %v1144_v25 = vpop.permute.xlu1 %1143 }
  0xd8   : > { %v1146_v61 = vunpack.i.h.bf16 %v1144_v25  ;;  %v1145_v63 = vunpack.i.l.bf16 %v1144_v25 }
  0xd9   : > { %v1124_v14 = vpop.permute.xlu0 %1123 }
  0xda   : > { %v1126_v27 = vunpack.i.h.bf16 %v1124_v14  ;;  %v1125_v28 = vunpack.i.l.bf16 %v1124_v14  ;;  %v671_v10 = vsel %vm664_vm8, %v662_v5, %v1145_v63  ;;  %v672_v11 = vsel %vm664_vm8, %v663_v6, %v1146_v61 }
  0xdc   : > { %v667_v45 = vsel %vm664_vm8, %v658_v15, %v1125_v28  ;;  %v668_v48 = vsel %vm664_vm8, %v659_v43, %v1126_v27 }
  0xdf   : > { %v1159_v40 = vpop.permute.xlu1 %1158 }
  0xe0   : > { %v1161_v3 = vunpack.i.h.bf16 %v1159_v40  ;;  %v1160_v4 = vunpack.i.l.bf16 %v1159_v40 }
  0xe1   : > { %v1139_v34 = vpop.permute.xlu0 %1138 }
  0xe2   : > { %v1141_v18 = vunpack.i.h.bf16 %v1139_v34  ;;  %v1140_v19 = vunpack.i.l.bf16 %v1139_v34 }
  0xe4   : > { %v676_v51 = vsel %vm673_vm9, %v667_v45, %v1140_v19  ;;  %v677_v52 = vsel %vm673_vm9, %v668_v48, %v1141_v18 }
  0xe5   : > { %v685_v53 = vsel %vm682_vm10, %v676_v51, %v1150_v56  ;;  %v686_v24 = vsel %vm682_vm10, %v677_v52, %v1151_v36 }
  0xe6   : > { %v692_v58 = vpack.c.bf16 %v686_v24, %v685_v53 }
  0xe8   : > { %960 = vmatmul.msk.bf16.vlgmr.msra.gmra.mxu1 %vm731_vm11, %v692_v58 }
  0xe9   : > { %v1154_v2 = vpop.permute.xlu0 %1153 }
  0xea   : > { %v1156_v0 = vunpack.i.h.bf16 %v1154_v2  ;;  %v1155_v7 = vunpack.i.l.bf16 %v1154_v2 }
  0xec   : > { %v680_v13 = vsel %vm673_vm9, %v671_v10, %v1155_v7  ;;  %v681_v1 = vsel %vm673_vm9, %v672_v11, %v1156_v0 }
  0xed   : > { %v689_v9 = vsel %vm682_vm10, %v680_v13, %v1160_v4  ;;  %v690_v14 = vsel %vm682_vm10, %v681_v1, %v1161_v3 }
  0xee   : > { %v694_v16 = vpack.c.bf16 %v690_v14, %v689_v9 }
  0xf0   : > { %962 = vmatmul.msk.bf16.vlgmr.msra.gmra.mxu3 %vm731_vm11, %v694_v16 }
 0x145   : > { %v757_v62 = vpop.f32.mrf.mxu0 }
 0x146   : > { %v777_v17 = vpack.c.bf16 %v757_v62, %v757_v62  ;;  %v815_v47 = vmul.f32 %v757_v62, %v757_v62  ;;  %v794_v33 = vsel %vm619_vm3, %v757_v62, 0.0 }
 0x148   : > { %786 = vst.msk [vmem:[%s1584_s26] sm:$0xf] %vm785_vm12, %v777_v17  ;;  %v823_v28 = vsel %vm619_vm3, %v815_v47, 0.0 }
 0x14d   : > { %v759_v55 = vpop.f32.mrf.mxu0 }
 0x14e   : > { %v778_v39 = vpack.c.bf16 %v759_v55, %v759_v55  ;;  %v816_v57 = vmul.f32 %v759_v55, %v759_v55  ;;  %v795_v23 = vsel %vm619_vm3, %v759_v55, 0.0 }
 0x14f   : > { %v796_v27 = vadd.f32 %v795_v23, %v794_v33 }
 0x150   : > { %787 = vst.msk [vmem:[%s1584_s26 + $0x4] sm:$0xf] %vm785_vm12, %v778_v39  ;;  %v824_v46 = vsel %vm619_vm3, %v816_v57, 0.0 }
 0x151   : > { %v825_v38 = vadd.f32 %v824_v46, %v823_v28 }
 0x158   : > { %v767_v20 = vpop.f32.mrf.mxu2 }
 0x159   : > { %v781_v42 = vpack.c.bf16 %v767_v20, %v767_v20  ;;  %v819_v15 = vmul.f32 %v767_v20, %v767_v20  ;;  %v801_v19 = vsel %vm619_vm3, %v767_v20, 0.0 }
 0x15b   : > { %790 = vst.msk [vmem:[%s1584_s26 + $0x10] sm:$0xf] %vm785_vm12, %v781_v42  ;;  %v830_v45 = vsel %vm619_vm3, %v819_v15, 0.0 }
 0x160   : > { %v769_v21 = vpop.f32.mrf.mxu2 }
 0x161   : > { %v782_v41 = vpack.c.bf16 %v769_v21, %v769_v21  ;;  %v820_v48 = vmul.f32 %v769_v21, %v769_v21  ;;  %v803_v51 = vsel %vm619_vm3, %v769_v21, 0.0 }
 0x163   : > { %791 = vst.msk [vmem:[%s1584_s26 + $0x14] sm:$0xf] %vm785_vm12, %v782_v41  ;;  %v832_v24 = vsel %vm619_vm3, %v820_v48, 0.0 }
 0x165   : > { %v762_v59 = vpop.f32.mrf.mxu1 }
 0x166   : > { %v779_v22 = vpack.c.bf16 %v762_v59, %v762_v59  ;;  %v817_v25 = vmul.f32 %v762_v59, %v762_v59  ;;  %v797_v26 = vsel %vm619_vm3, %v762_v59, 0.0 }
 0x167   : > { %v798_v29 = vadd.f32 %v797_v26, %v796_v27 }
 0x168   : > { %788 = vst.msk [vmem:[%s1584_s26 + $0x8] sm:$0xf] %vm785_vm12, %v779_v22  ;;  %v826_v60 = vsel %vm619_vm3, %v817_v25, 0.0 }
 0x169   : > { %v827_v36 = vadd.f32 %v826_v60, %v825_v38 }
 0x16d   : > { %v764_v35 = vpop.f32.mrf.mxu1 }
 0x16e   : > { %v780_v30 = vpack.c.bf16 %v764_v35, %v764_v35  ;;  %v799_v31 = vsel %vm619_vm3, %v764_v35, 0.0  ;;  %v818_v34 = vmul.f32 %v764_v35, %v764_v35 }
 0x16f   : > { %v800_v56 = vadd.f32 %v799_v31, %v798_v29 }
 0x170   : > { %789 = vst.msk [vmem:[%s1584_s26 + $0xc] sm:$0xf] %vm785_vm12, %v780_v30  ;;  %v828_v43 = vsel %vm619_vm3, %v818_v34, 0.0 }
 0x171   : > { %v829_v18 = vadd.f32 %v828_v43, %v827_v36  ;;  %v802_v44 = vadd.f32 %v801_v19, %v800_v56 }
 0x173   : > { %v772_v12 = vpop.f32.mrf.mxu3  ;;  %v831_v50 = vadd.f32 %v830_v45, %v829_v18  ;;  %v804_v53 = vadd.f32 %v803_v51, %v802_v44 }
 0x174   : > { %v783_v49 = vpack.c.bf16 %v772_v12, %v772_v12  ;;  %v821_v52 = vmul.f32 %v772_v12, %v772_v12  ;;  %v805_v54 = vsel %vm619_vm3, %v772_v12, 0.0 }
 0x175   : > { %v833_v37 = vadd.f32 %v832_v24, %v831_v50  ;;  %v806_v40 = vadd.f32 %v805_v54, %v804_v53 }
 0x176   : > { %792 = vst.msk [vmem:[%s1584_s26 + $0x18] sm:$0xf] %vm785_vm12, %v783_v49  ;;  %v834_v58 = vsel %vm619_vm3, %v821_v52, 0.0 }
 0x177   : > { %v835_v2 = vadd.f32 %v834_v58, %v833_v37 }
 0x17b   : > { %v774_v32 = vpop.f32.mrf.mxu3 }
 0x17c   : > { %v784_v8 = vpack.c.bf16 %v774_v32, %v774_v32  ;;  %v807_v61 = vsel %vm619_vm3, %v774_v32, 0.0  ;;  %v822_v63 = vmul.f32 %v774_v32, %v774_v32 }
 0x17d   : > { %v808_v3 = vadd.f32 %v807_v61, %v806_v40 }
 0x17e   : > { %793 = vst.msk [vmem:[%s1584_s26 + $0x1c] sm:$0xf] %vm785_vm12, %v784_v8  ;;  %v836_v4 = vsel %vm619_vm3, %v822_v63, 0.0 }
 0x17f   : > { %v809_v5 = vrot.slane %v808_v3, 4  ;;  %v837_v6 = vadd.f32 %v836_v4, %v835_v2 }
 0x181   : > { %v810_v0 = vadd.f32 %v809_v5, %v808_v3  ;;  %v838_v7 = vrot.slane %v837_v6, 4 }
 0x183   : > { %v811_v10 = vrot.slane %v810_v0, 2  ;;  %v839_v11 = vadd.f32 %v838_v7, %v837_v6 }
 0x185   : > { %v812_v13 = vadd.f32 %v811_v10, %v810_v0  ;;  %v840_v1 = vrot.slane %v839_v11, 2 }
 0x187   : > { %v813_v9 = vrot.slane %v812_v13, 1  ;;  %v841_v14 = vadd.f32 %v840_v1, %v839_v11 }
 0x189   : > { %v842_v16 = vrot.slane %v841_v14, 1  ;;  %v814_v62 = vadd.f32 %v813_v9, %v812_v13 }
 0x18b   : > { %v843_v17 = vadd.f32 %v842_v16, %v841_v14 }
 0x18d   : > { %v845_v55 = vsel %vm844_vm13, %v814_v62, %v843_v17 }
 0x18e   : > { %847 = vst.msk [vmem:[%s235_s30] sm:$0x3] %vm846_vm14, %v845_v55 }
 0x18f PF: > { %s16_s18 = sadd.s32 1, %s1170_s18  }
 0x190   : > { %p13_p4 = scmp.ge.s32.totalorder %s16_s18, 4  }
 0x192   :  { %15 = sbr.rel (!%p13_p4) target bundleno = 1 (0x1), region = 78 }

// kernel: bottleneck_forward.7
= control target key start
LH: loop header
LB: loop body
LE: loop exit
PB: predicated region body
PF: predicated region fallthrough
CT: control target
= control target key end

     0   :  { %vm138_vm0 = vcmask 261120   ;;  %s404_s0 = inlined_call_operand.vmem [shape: bf16[128,32], index: 0, kind: input, shape index: {}]   ;;  %s405_s1 = inlined_call_operand.vmem [shape: f32[128,32], index: 1, kind: input, shape index: {}]   ;;  %s406_s2 = inlined_call_operand.vmem [shape: f32[1,32], index: 2, kind: input, shape index: {}]   ;;  %s407_s3 = inlined_call_operand.vmem [shape: f32[1,32], index: 3, kind: input, shape index: {}]   ;;  %s408_s4 = inlined_call_operand.hbm [shape: f32[128,32], index: 4, kind: output, shape index: {}]  }
   0x1   :  { %v174_v0 = vld [vmem:[%s404_s0] sm:$0xff]   ;;  %v205_v5 = vld [vmem:[%s404_s0 + $0x8] sm:$0xff]   ;;  %v206_v10 = vld [vmem:[%s404_s0 + $0x10] sm:$0xff]  }
   0x2   :  { %v277_v1 = vld [vmem:[%s406_s2] ss:$0 sm:$0xff]  ;;  %v175_v2 = vunpack.c.l.bf16 %v174_v0  ;;  %v176_v4 = vunpack.c.h.bf16 %v174_v0  ;;  %v179_v8 = vunpack.c.l.bf16 %v205_v5  ;;  %v180_v9 = vunpack.c.h.bf16 %v205_v5  ;;  %v91_v12 = vld [vmem:[%s405_s1 + $0x8] sm:$0xff]  ;;  %v207_v15 = vld [vmem:[%s404_s0 + $0x18] sm:$0xff]  }
   0x3   :  { %v282_v3 = vld [vmem:[%s407_s3] ss:$0 sm:$0xff]  ;;  %v183_v13 = vunpack.c.l.bf16 %v206_v10  ;;  %v184_v14 = vunpack.c.h.bf16 %v206_v10  ;;  %v92_v20 = vld [vmem:[%s405_s1 + $0x10] sm:$0xff]  ;;  %v93_v21 = vld [vmem:[%s405_s1 + $0x18] sm:$0xff]  ;;  %v187_v24 = vunpack.c.l.bf16 %v207_v15  ;;  %v188_v25 = vunpack.c.h.bf16 %v207_v15 }
   0x4   :  { %v54_v6 = vmul.f32 %v277_v1, %v175_v2  ;;  %v55_v7 = vmul.f32 %v277_v1, %v176_v4  ;;  %v90_v11 = vld [vmem:[%s405_s1] sm:$0xff]  ;;  %v56_v18 = vmul.f32 %v277_v1, %v179_v8  ;;  %v57_v19 = vmul.f32 %v277_v1, %v180_v9  ;;  %v95_v31 = vld [vmem:[%s405_s1 + $0x28] sm:$0xff]  ;;  %v96_v41 = vld [vmem:[%s405_s1 + $0x30] sm:$0xff] }
   0x5   :  { %v58_v22 = vmul.f32 %v277_v1, %v183_v13  ;;  %v59_v23 = vmul.f32 %v277_v1, %v184_v14  ;;  %v94_v30 = vld [vmem:[%s405_s1 + $0x20] sm:$0xff]  ;;  %v60_v34 = vmul.f32 %v277_v1, %v187_v24  ;;  %v61_v35 = vmul.f32 %v277_v1, %v188_v25  ;;  %v97_v42 = vld [vmem:[%s405_s1 + $0x38] sm:$0xff] }
   0x6   :  { %v74_v16 = vadd.f32 %v282_v3, %v54_v6  ;;  %v75_v17 = vadd.f32 %v282_v3, %v55_v7  ;;  %v76_v28 = vadd.f32 %v282_v3, %v56_v18  ;;  %v77_v29 = vadd.f32 %v282_v3, %v57_v19  ;;  %v208_v36 = vld [vmem:[%s404_s0 + $0x20] sm:$0xff]  }
   0x7   :  { %v78_v32 = vadd.f32 %v282_v3, %v58_v22  ;;  %v79_v33 = vadd.f32 %v282_v3, %v59_v23 }
   0x8   :  { %v106_v26 = vadd.f32 %v90_v11, %v74_v16  ;;  %v107_v27 = vadd.f32 %v91_v12, %v75_v17  ;;  %v108_v39 = vadd.f32 %v92_v20, %v76_v28  ;;  %v109_v40 = vadd.f32 %v93_v21, %v77_v29 }
   0xa   :  { %v122_v37 = vmax.f32 %v106_v26, 0.0  ;;  %v123_v38 = vmax.f32 %v107_v27, 0.0 }
   0xb   :  { %9 = vsyncpa [#allocation3], 0  ;;  %v110_v43 = vadd.f32 %v94_v30, %v78_v32  ;;  %v111_v44 = vadd.f32 %v95_v31, %v79_v33  ;;  %v80_v45 = vadd.f32 %v282_v3, %v60_v34  ;;  %v81_v46 = vadd.f32 %v282_v3, %v61_v35  ;;  %v209_v47 = vld [vmem:[%s404_s0 + $0x28] sm:$0xff]   ;;  %v210_v52 = vld [vmem:[%s404_s0 + $0x30] sm:$0xff]   ;;  %s243_s10 = smov [#allocation2]   ;;  %s161_s13 = sshll.u32 %s408_s4, 4  ;;  %s162_s13 = int_to_ptr.hbm [resolvable:$true] %s161_s13 }
   0xc   :  { %139 = vst.msk [vmem:[#allocation2] sm:$0xff] %vm138_vm0, %v122_v37  ;;  %v124_v48 = vmax.f32 %v108_v39, 0.0  ;;  %v125_v49 = vmax.f32 %v109_v40, 0.0  ;;  %v191_v50 = vunpack.c.l.bf16 %v208_v36  ;;  %v192_v51 = vunpack.c.h.bf16 %v208_v36  ;;  %v211_v61 = vld [vmem:[%s404_s0 + $0x38] sm:$0xff]   ;;  %v98_v0 = vld [vmem:[%s405_s1 + $0x40] sm:$0xff]  ;;  %v99_v2 = vld [vmem:[%s405_s1 + $0x48] sm:$0xff] }
   0xd   :  { %140 = vst.msk [vmem:[#allocation2 + $0x8] sm:$0xff] %vm138_vm0, %v123_v38  ;;  %v126_v53 = vmax.f32 %v110_v43, 0.0  ;;  %v127_v54 = vmax.f32 %v111_v44, 0.0  ;;  %v112_v55 = vadd.f32 %v96_v41, %v80_v45  ;;  %v113_v56 = vadd.f32 %v97_v42, %v81_v46  ;;  %v100_v10 = vld [vmem:[%s405_s1 + $0x50] sm:$0xff]  ;;  %v101_v11 = vld [vmem:[%s405_s1 + $0x58] sm:$0xff]  ;;  %v102_v20 = vld [vmem:[%s405_s1 + $0x60] sm:$0xff] }
   0xe   :  { %141 = vst.msk [vmem:[#allocation2 + $0x10] sm:$0xff] %vm138_vm0, %v124_v48  ;;  %v62_v57 = vmul.f32 %v277_v1, %v191_v50  ;;  %v63_v58 = vmul.f32 %v277_v1, %v192_v51  ;;  %v195_v59 = vunpack.c.l.bf16 %v209_v47  ;;  %v196_v60 = vunpack.c.h.bf16 %v209_v47  ;;  %v103_v21 = vld [vmem:[%s405_s1 + $0x68] sm:$0xff]  ;;  %v104_v30 = vld [vmem:[%s405_s1 + $0x70] sm:$0xff]  ;;  %v105_v31 = vld [vmem:[%s405_s1 + $0x78] sm:$0xff]  ;;  %s159_s11 = sshll.u32 %s243_s10, 4  ;;  %s244_s14 = smov 128   ;;  %s160_s11 = int_to_ptr.vmem [resolvable:$true] %s159_s11 }
   0xf   :  { %142 = vst.msk [vmem:[#allocation2 + $0x18] sm:$0xff] %vm138_vm0, %v125_v49  ;;  %v128_v62 = vmax.f32 %v112_v55, 0.0  ;;  %v129_v63 = vmax.f32 %v113_v56, 0.0  ;;  %v199_v4 = vunpack.c.l.bf16 %v210_v52  ;;  %v200_v5 = vunpack.c.h.bf16 %v210_v52  ;;  %s245_s15 = smov 8  }
  0x10   :  { %143 = vst.msk [vmem:[#allocation2 + $0x20] sm:$0xff] %vm138_vm0, %v126_v53  ;;  %v82_v6 = vadd.f32 %v282_v3, %v62_v57  ;;  %v83_v7 = vadd.f32 %v282_v3, %v63_v58  ;;  %v64_v8 = vmul.f32 %v277_v1, %v195_v59  ;;  %v65_v9 = vmul.f32 %v277_v1, %v196_v60 }
  0x11   :  { %144 = vst.msk [vmem:[#allocation2 + $0x28] sm:$0xff] %vm138_vm0, %v127_v54  ;;  %v66_v12 = vmul.f32 %v277_v1, %v199_v4  ;;  %v67_v13 = vmul.f32 %v277_v1, %v200_v5  ;;  %v203_v14 = vunpack.c.l.bf16 %v211_v61  ;;  %v204_v15 = vunpack.c.h.bf16 %v211_v61 }
  0x12   :  { %145 = vst.msk [vmem:[#allocation2 + $0x30] sm:$0xff] %vm138_vm0, %v128_v62  ;;  %v114_v16 = vadd.f32 %v98_v0, %v82_v6  ;;  %v115_v17 = vadd.f32 %v99_v2, %v83_v7  ;;  %v84_v18 = vadd.f32 %v282_v3, %v64_v8  ;;  %v85_v19 = vadd.f32 %v282_v3, %v65_v9 }
  0x13   :  { %146 = vst.msk [vmem:[#allocation2 + $0x38] sm:$0xff] %vm138_vm0, %v129_v63  ;;  %v86_v22 = vadd.f32 %v282_v3, %v66_v12  ;;  %v87_v23 = vadd.f32 %v282_v3, %v67_v13  ;;  %v68_v24 = vmul.f32 %v277_v1, %v203_v14  ;;  %v69_v25 = vmul.f32 %v277_v1, %v204_v15 }
  0x14   :  { %v130_v26 = vmax.f32 %v114_v16, 0.0  ;;  %v131_v27 = vmax.f32 %v115_v17, 0.0  ;;  %v116_v28 = vadd.f32 %v100_v10, %v84_v18  ;;  %v117_v29 = vadd.f32 %v101_v11, %v85_v19 }
  0x15   :  { %v118_v32 = vadd.f32 %v102_v20, %v86_v22  ;;  %v119_v33 = vadd.f32 %v103_v21, %v87_v23  ;;  %v88_v34 = vadd.f32 %v282_v3, %v68_v24  ;;  %v89_v35 = vadd.f32 %v282_v3, %v69_v25 }
  0x16   :  { %147 = vst.msk [vmem:[#allocation2 + $0x40] sm:$0xff] %vm138_vm0, %v130_v26  ;;  %v132_v1 = vmax.f32 %v116_v28, 0.0  ;;  %v133_v36 = vmax.f32 %v117_v29, 0.0 }
  0x17   :  { %148 = vst.msk [vmem:[#allocation2 + $0x48] sm:$0xff] %vm138_vm0, %v131_v27  ;;  %v134_v37 = vmax.f32 %v118_v32, 0.0  ;;  %v135_v38 = vmax.f32 %v119_v33, 0.0  ;;  %v120_v39 = vadd.f32 %v104_v30, %v88_v34  ;;  %v121_v40 = vadd.f32 %v105_v31, %v89_v35 }
  0x18   :  { %149 = vst.msk [vmem:[#allocation2 + $0x50] sm:$0xff] %vm138_vm0, %v132_v1 }
  0x19   :  { %150 = vst.msk [vmem:[#allocation2 + $0x58] sm:$0xff] %vm138_vm0, %v133_v36  ;;  %v136_v3 = vmax.f32 %v120_v39, 0.0  ;;  %v137_v41 = vmax.f32 %v121_v40, 0.0 }
  0x1a   :  { %151 = vst.msk [vmem:[#allocation2 + $0x60] sm:$0xff] %vm138_vm0, %v134_v37 }
  0x1b   :  { %152 = vst.msk [vmem:[#allocation2 + $0x68] sm:$0xff] %vm138_vm0, %v135_v38 }
  0x1c   :  { %153 = vst.msk [vmem:[#allocation2 + $0x70] sm:$0xff] %vm138_vm0, %v136_v3 }
  0x1d   :  { %154 = vst.msk [vmem:[#allocation2 + $0x78] sm:$0xff] %vm138_vm0, %v137_v41 }
  0x1e   :  { %167 = dma.vmem_to_hbm [thread:$0]  %s160_s11, 2048, %s162_s13, [#allocation3], %s244_s14, %s244_s14, %s245_s15  }
  0x1f   :  { %241 = dma.done.wait [#allocation3], 2048  }
  0x20   :  { %242 = vsyncadd [#allocation3], 4294965248 }
  0x21   :  { %172 = vsyncpa [#allocation3], 1 }

</bundles_post_ra>
